<compile_context>
chip_gen: v5e
topology: v5e:2x2
jax: 0.10.0
libtpu: 0.0.40
codegen_flags: <defaults>
</compile_context>

<pallas_src>
import functools

import jax
import jax.numpy as jnp
from jax import lax
from jax.experimental import pallas as pl
from jax.experimental.pallas import tpu as pltpu

_LANE = 128
_MIB = 1 << 20


def _round_up(x, m):
    return ((x + m - 1) // m) * m


def _pick_block_e(E, per_edge_bytes, cap, min_steps=4):
    """Lane-aligned edge tile: fits a 16 MiB streaming budget, capped, and small
    enough that large-E problems get >= min_steps grid steps (v7x megacore)."""
    budget = 16 * _MIB
    be = budget // max(int(per_edge_bytes), 1)
    be = min(be, cap)
    be = min(be, max(_LANE, _round_up(-(-E // min_steps), _LANE)))
    be = max(_LANE, (be // _LANE) * _LANE)
    return int(be)


def _bf16_chunks(t_f32, n_chunks=3):
    """Split an f32 array into bf16 chunks with t ~= sum(chunks) (~24 mantissa bits).

    Gathering each chunk through a 0/1 one-hot with a bf16 MXU matmul and f32
    accumulation is exact, so the overall gather is f32-accurate regardless of
    the default f32 matmul precision."""
    chunks = []
    rem = t_f32
    for _ in range(n_chunks):
        c = rem.astype(jnp.bfloat16)
        chunks.append(c)
        rem = rem - c.astype(jnp.float32)
    return chunks


def _gather_cols(chunks, onehot_bf16):
    """chunks of a (D, N) table, one-hot (N, BE) -> gathered (D, BE) f32."""
    acc = None
    for c in chunks:
        p = jnp.dot(c, onehot_bf16, preferred_element_type=jnp.float32)
        acc = p if acc is None else acc + p
    return acc


def _gather_rows(onehot_bf16, chunks):
    """one-hot (BE, N), chunks of a (N, D) table -> gathered (BE, D) f32."""
    acc = None
    for c in chunks:
        p = jnp.dot(onehot_bf16, c, preferred_element_type=jnp.float32)
        acc = p if acc is None else acc + p
    return acc


def _fused_gather_kernel(src_ref, dst_ref, rel_ref,
                         xre_ref, xim_ref, rre_ref, rim_ref, out_ref):
    """Fully fused path: tables are VMEM-resident, all three gathers in-kernel.

    src/dst/rel: (1, block_e) int32; x tables: (D, n_nodes); R tables: (D, n_rel);
    out: (1, block_e) f32 (lane-dense output)."""
    block_e = src_ref.shape[1]
    n_nodes = xre_ref.shape[1]
    n_rel = rre_ref.shape[1]

    def onehot(idx_row, n):
        # (n, block_e) exact 0/1 one-hot in bf16 (bool -> f32 -> bf16).
        iota = lax.broadcasted_iota(jnp.int32, (n, block_e), 0)
        return (iota == idx_row).astype(jnp.float32).astype(jnp.bfloat16)

    xre_c = _bf16_chunks(xre_ref[...])
    xim_c = _bf16_chunks(xim_ref[...])
    rre_c = _bf16_chunks(rre_ref[...])
    rim_c = _bf16_chunks(rim_ref[...])

    oh = onehot(src_ref[...], n_nodes)
    a = _gather_cols(xre_c, oh)          # s real  (D, block_e)
    b = _gather_cols(xim_c, oh)          # s imag

    oh = onehot(dst_ref[...], n_nodes)
    e = _gather_cols(xre_c, oh)          # o real
    f = _gather_cols(xim_c, oh)          # o imag

    oh = onehot(rel_ref[...], n_rel)
    c = _gather_cols(rre_c, oh)          # r real
    d = _gather_cols(rim_c, oh)          # r imag

    # Re[(a+bi)(c+di)(e+fi)] = a*(ce - df) - b*(de + cf)   (6 multiplies)
    real_prod = a * (c * e - d * f) - b * (d * e + c * f)
    out_ref[...] = jnp.sum(real_prod, axis=0, keepdims=True)


def _stream_kernel(*refs, fuse_rel):
    """Streaming fallback: s/o planes gathered by XLA as (block_e, D) row tiles;
    the (usually tiny) relation gather is fused in-kernel when fuse_rel."""
    if fuse_rel:
        (s_re_ref, s_im_ref, o_re_ref, o_im_ref,
         rel_ref, rre_ref, rim_ref, out_ref) = refs
    else:
        (s_re_ref, s_im_ref, r_re_ref, r_im_ref,
         o_re_ref, o_im_ref, out_ref) = refs

    a = s_re_ref[...]
    b = s_im_ref[...]
    e = o_re_ref[...]
    f = o_im_ref[...]

    if fuse_rel:
        block_e = a.shape[0]
        n_rel = rre_ref.shape[0]
        iota = lax.broadcasted_iota(jnp.int32, (block_e, n_rel), 1)
        oh = (iota == rel_ref[...]).astype(jnp.float32).astype(jnp.bfloat16)
        c = _gather_rows(oh, _bf16_chunks(rre_ref[...]))
        d = _gather_rows(oh, _bf16_chunks(rim_ref[...]))
    else:
        c = r_re_ref[...]
        d = r_im_ref[...]

    real_prod = a * (c * e - d * f) - b * (d * e + c * f)
    out_ref[...] = jnp.sum(real_prod, axis=1, keepdims=True)


def complex_decoder_forward(x, R_diagonal, edge_index, edge_type, *,
                            training=False, block_e=None,
                            fuse_nodes=None, fuse_rel=None,
                            max_fused_nodes=256, max_fused_rels=1024):
    """ComplEx decoder forward.

    Args:
      x:           complex64 (n_nodes, D) node features (D == module's n_entities).
      R_diagonal:  complex64 (n_relations, D) relation diagonals.
      edge_index:  int (2, E).
      edge_type:   int (E,).
      training:    apply F.normalize(dim=1) to s and o when True.
      block_e:     optional explicit edge-tile width (lanes).
      fuse_nodes / fuse_rel: force/override the gather-fusion heuristics.

    Returns:
      float32 (E,): real part of the ComplEx score.
    """
    n_nodes, D = x.shape
    n_rel = R_diagonal.shape[0]
    E = int(edge_type.shape[0])

    x_re = jnp.real(x).astype(jnp.float32)
    x_im = jnp.imag(x).astype(jnp.float32)
    r_re = jnp.real(R_diagonal).astype(jnp.float32)
    r_im = jnp.imag(R_diagonal).astype(jnp.float32)

    if training:
        # F.normalize(x, dim=1)[idx] == F.normalize(x[idx], dim=1): normalize the
        # small node table once instead of per-edge in the kernel.
        # 1/max(||v||, 1e-12) == rsqrt(max(sum|v|^2, 1e-24)).
        inv = lax.rsqrt(jnp.maximum(
            jnp.sum(x_re * x_re + x_im * x_im, axis=1, keepdims=True),
            jnp.float32(1e-24)))
        x_re = x_re * inv
        x_im = x_im * inv

    if fuse_rel is None:
        fuse_rel = (n_rel <= max_fused_rels) and (2 * n_rel * D * 4 <= 4 * _MIB)
    if fuse_nodes is None:
        fuse_nodes = (n_nodes <= max_fused_nodes) and (2 * n_nodes * D * 4 <= 8 * _MIB)
    fuse_nodes = bool(fuse_nodes) and bool(fuse_rel)  # full fusion needs both tables
    fuse_rel = bool(fuse_rel)

    src = edge_index[0, :].astype(jnp.int32)
    dst = edge_index[1, :].astype(jnp.int32)
    rel = edge_type.astype(jnp.int32)

    # --- tile sizing (per-edge VMEM estimates include (8,128) physical padding) ---
    if fuse_nodes:
        per_edge = (2 * 4 * 8 * 4                 # double-buffered idx rows + score row
                    + 6 * D * 4                   # six gathered (D, be) planes
                    + 3 * D * 4                   # complex-product temporaries
                    + 2 * (2 * n_nodes + n_rel)   # bf16 one-hots
                    + 4 * max(n_nodes, n_rel))    # bool->f32 one-hot intermediate
        cap = 2048
    else:
        d_lane = _round_up(D, _LANE)
        nr_lane = _round_up(n_rel, _LANE)
        n_planes = 4 if fuse_rel else 6
        per_edge = (2 * n_planes * d_lane * 4     # double-buffered gathered planes
                    + 2 * 2 * _LANE * 4           # (be,1) rel-idx + score columns
                    + 3 * d_lane * 4              # c, d, real_prod temporaries
                    + (nr_lane * 2 if fuse_rel else 0))
        cap = 4096

    if block_e is None:
        be = _pick_block_e(E, per_edge, cap)
    else:
        be = max(_LANE, _round_up(int(block_e), _LANE))

    # Pad only the tiny index vectors; bulk data is produced at padded width.
    E_pad = _round_up(E, be)
    if E_pad != E:
        pad = E_pad - E
        src = jnp.pad(src, (0, pad))
        dst = jnp.pad(dst, (0, pad))
        rel = jnp.pad(rel, (0, pad))

    grid = (E_pad // be,)

    if fuse_nodes:
        table_bytes = 2 * (n_nodes + n_rel) * D * 4
    elif fuse_rel:
        table_bytes = 2 * n_rel * D * 4
    else:
        table_bytes = 0
    need = per_edge * be + 2 * table_bytes + 2 * _MIB
    # v5e's default scoped-VMEM limit is 16 MiB (v6e/v7x: 32 MiB).  Request what we
    # need explicitly, staying under v7x's 64 MiB physical VMEM.
    # TODO(synk): for extremely large D even block_e=128 may not fit; split D across
    # a second ("arbitrary") grid axis with an accumulator in that case.
    vmem_limit = int(min(max(32 * _MIB, need + 8 * _MIB), 48 * _MIB))
    cparams = pltpu.CompilerParams(
        dimension_semantics=("parallel",),
        vmem_limit_bytes=vmem_limit)

    if fuse_nodes:
        # Fully fused path: only indices + scores stream through HBM per edge;
        # both tables (transposed, lane = entity/relation index) live in VMEM.
        xT_re = x_re.T          # (D, n_nodes)
        xT_im = x_im.T
        rT_re = r_re.T          # (D, n_rel)
        rT_im = r_im.T
        idx_spec = pl.BlockSpec((1, be), lambda i: (0, i))
        node_spec = pl.BlockSpec((D, n_nodes), lambda i: (0, 0))
        rel_spec = pl.BlockSpec((D, n_rel), lambda i: (0, 0))
        out = pl.pallas_call(
            _fused_gather_kernel,
            out_shape=jax.ShapeDtypeStruct((1, E_pad), jnp.float32),
            grid=grid,
            in_specs=[idx_spec, idx_spec, idx_spec,
                      node_spec, node_spec, rel_spec, rel_spec],
            out_specs=pl.BlockSpec((1, be), lambda i: (0, i)),
            compiler_params=cparams,
        )(src.reshape(1, E_pad), dst.reshape(1, E_pad), rel.reshape(1, E_pad),
          xT_re, xT_im, rT_re, rT_im)
        return out[0, :E]

    # Streaming fallback: natural axis-0 row gathers in XLA (no minor-axis take,
    # so no hidden transpose pass), relation gather fused in-kernel when small.
    s_re = jnp.take(x_re, src, axis=0)      # (E_pad, D)
    s_im = jnp.take(x_im, src, axis=0)
    o_re = jnp.take(x_re, dst, axis=0)
    o_im = jnp.take(x_im, dst, axis=0)

    plane_spec = pl.BlockSpec((be, D), lambda i: (i, 0))
    col_spec = pl.BlockSpec((be, 1), lambda i: (i, 0))
    if fuse_rel:
        rtab_spec = pl.BlockSpec((n_rel, D), lambda i: (0, 0))
        args = (s_re, s_im, o_re, o_im, rel.reshape(E_pad, 1), r_re, r_im)
        in_specs = [plane_spec] * 4 + [col_spec, rtab_spec, rtab_spec]
    else:
        args = (s_re, s_im,
                jnp.take(r_re, rel, axis=0), jnp.take(r_im, rel, axis=0),
                o_re, o_im)
        in_specs = [plane_spec] * 6

    out = pl.pallas_call(
        functools.partial(_stream_kernel, fuse_rel=fuse_rel),
        out_shape=jax.ShapeDtypeStruct((E_pad, 1), jnp.float32),
        grid=grid,
        in_specs=in_specs,
        out_specs=col_spec,
        compiler_params=cparams,
    )(*args)
    return out[:E, 0]


def _reference(x, R_diagonal, edge_index, edge_type, training=False):
    s = x[edge_index[0, :]]
    o = x[edge_index[1, :]]
    r = R_diagonal[edge_type]
    if training:
        eps = 1e-12
        s = s / jnp.maximum(jnp.linalg.norm(s, axis=1, keepdims=True), eps)
        o = o / jnp.maximum(jnp.linalg.norm(o, axis=1, keepdims=True), eps)
    return jnp.real(jnp.sum(s * r * o, axis=1)).astype(jnp.float32)


if __name__ == "__main__":
    key = jax.random.PRNGKey(0)
    n_nodes = 64
    D = 32              # embedding dim (the module's "n_entities" argument)
    n_relations = 8
    E = 1000            # NOT a multiple of 128: exercises padding + multi-step grid

    k1, k2, k3, k4, k5, k6 = jax.random.split(key, 6)
    x = (jax.random.normal(k1, (n_nodes, D), dtype=jnp.float32)
         + 1j * jax.random.normal(k2, (n_nodes, D), dtype=jnp.float32)
         ).astype(jnp.complex64)
    R_diagonal = (jax.random.normal(k3, (n_relations, D), dtype=jnp.float32)
                  + 1j * jax.random.normal(k4, (n_relations, D),
                                           dtype=jnp.float32)
                  ).astype(jnp.complex64)
    edge_index = jax.random.randint(k5, (2, E), 0, n_nodes, dtype=jnp.int32)
    edge_type = jax.random.randint(k6, (E,), 0, n_relations, dtype=jnp.int32)

    ref = _reference(x, R_diagonal, edge_index, edge_type, training=False)
    ref_tr = _reference(x, R_diagonal, edge_index, edge_type, training=True)

    # 1) Fully fused gather path (tables VMEM-resident, one-hot MXU gathers).
    out = complex_decoder_forward(x, R_diagonal, edge_index, edge_type)
    jax.block_until_ready(out)
    assert out.shape == (E,) and out.dtype == jnp.float32
    assert jnp.allclose(out, ref, rtol=1e-4, atol=1e-4)

    # 2) Training path (node table normalized once in the wrapper).
    out_tr = complex_decoder_forward(x, R_diagonal, edge_index, edge_type,
                                     training=True)
    jax.block_until_ready(out_tr)
    assert jnp.allclose(out_tr, ref_tr, rtol=1e-4, atol=1e-4)

    # 3) Streaming fallback (node gathers in XLA, relation gather fused in-kernel).
    out_fb = complex_decoder_forward(x, R_diagonal, edge_index, edge_type,
                                     fuse_nodes=False)
    jax.block_until_ready(out_fb)
    assert jnp.allclose(out_fb, ref, rtol=1e-4, atol=1e-4)

    # 4) Fully un-fused fallback with an explicit tile width (tail padding path).
    out_un = complex_decoder_forward(x, R_diagonal, edge_index, edge_type,
                                     fuse_nodes=False, fuse_rel=False,
                                     block_e=256)
    jax.block_until_ready(out_un)
    assert jnp.allclose(out_un, ref, rtol=1e-4, atol=1e-4)

    print("KERNEL_OK")
</pallas_src>

<mosaic_0001>
module attributes {stable_mosaic.version = 11 : i64} {
  func.func @_fused_gather_kernel(%arg0: i32, %arg1: memref<1x256xi32, #tpu.memory_space<vmem>>, %arg2: memref<1x256xi32, #tpu.memory_space<vmem>>, %arg3: memref<1x256xi32, #tpu.memory_space<vmem>>, %arg4: memref<32x64xf32, #tpu.memory_space<vmem>>, %arg5: memref<32x64xf32, #tpu.memory_space<vmem>>, %arg6: memref<32x8xf32, #tpu.memory_space<vmem>>, %arg7: memref<32x8xf32, #tpu.memory_space<vmem>>, %arg8: memref<1x256xf32, #tpu.memory_space<vmem>>) attributes {dimension_semantics = [#tpu.dimension_semantics<parallel>], iteration_bounds = array<i64: 4>, scalar_prefetch = 0 : i64, scratch_operands = 0 : i64, tpu.core_type = #tpu.core_type<tc>, window_params = [{transform_indices = @transform_0, window_bounds = array<i64: 1, 256>}, {transform_indices = @transform_1, window_bounds = array<i64: 1, 256>}, {transform_indices = @transform_2, window_bounds = array<i64: 1, 256>}, {pipeline_mode = #tpu.pipeline_mode<synchronous>, transform_indices = @transform_3, window_bounds = array<i64: 32, 64>}, {pipeline_mode = #tpu.pipeline_mode<synchronous>, transform_indices = @transform_4, window_bounds = array<i64: 32, 64>}, {pipeline_mode = #tpu.pipeline_mode<synchronous>, transform_indices = @transform_5, window_bounds = array<i64: 32, 8>}, {pipeline_mode = #tpu.pipeline_mode<synchronous>, transform_indices = @transform_6, window_bounds = array<i64: 32, 8>}, {transform_indices = @transform_7, window_bounds = array<i64: 1, 256>}]} {
    %c0 = arith.constant 0 : index
    %c0_0 = arith.constant 0 : index
    %0 = vector.load %arg4[%c0, %c0_0] : memref<32x64xf32, #tpu.memory_space<vmem>>, vector<32x64xf32>
    %1 = arith.truncf %0 : vector<32x64xf32> to vector<32x64xbf16>
    %2 = arith.extf %1 : vector<32x64xbf16> to vector<32x64xf32>
    %3 = arith.subf %0, %2 : vector<32x64xf32>
    %4 = arith.truncf %3 : vector<32x64xf32> to vector<32x64xbf16>
    %5 = arith.extf %4 : vector<32x64xbf16> to vector<32x64xf32>
    %6 = arith.subf %3, %5 : vector<32x64xf32>
    %7 = arith.truncf %6 : vector<32x64xf32> to vector<32x64xbf16>
    %c0_1 = arith.constant 0 : index
    %c0_2 = arith.constant 0 : index
    %8 = vector.load %arg5[%c0_1, %c0_2] : memref<32x64xf32, #tpu.memory_space<vmem>>, vector<32x64xf32>
    %9 = arith.truncf %8 : vector<32x64xf32> to vector<32x64xbf16>
    %10 = arith.extf %9 : vector<32x64xbf16> to vector<32x64xf32>
    %11 = arith.subf %8, %10 : vector<32x64xf32>
    %12 = arith.truncf %11 : vector<32x64xf32> to vector<32x64xbf16>
    %13 = arith.extf %12 : vector<32x64xbf16> to vector<32x64xf32>
    %14 = arith.subf %11, %13 : vector<32x64xf32>
    %15 = arith.truncf %14 : vector<32x64xf32> to vector<32x64xbf16>
    %c0_3 = arith.constant 0 : index
    %c0_4 = arith.constant 0 : index
    %16 = vector.load %arg6[%c0_3, %c0_4] : memref<32x8xf32, #tpu.memory_space<vmem>>, vector<32x8xf32>
    %17 = arith.truncf %16 : vector<32x8xf32> to vector<32x8xbf16>
    %18 = arith.extf %17 : vector<32x8xbf16> to vector<32x8xf32>
    %19 = arith.subf %16, %18 : vector<32x8xf32>
    %20 = arith.truncf %19 : vector<32x8xf32> to vector<32x8xbf16>
    %21 = arith.extf %20 : vector<32x8xbf16> to vector<32x8xf32>
    %22 = arith.subf %19, %21 : vector<32x8xf32>
    %23 = arith.truncf %22 : vector<32x8xf32> to vector<32x8xbf16>
    %c0_5 = arith.constant 0 : index
    %c0_6 = arith.constant 0 : index
    %24 = vector.load %arg7[%c0_5, %c0_6] : memref<32x8xf32, #tpu.memory_space<vmem>>, vector<32x8xf32>
    %25 = arith.truncf %24 : vector<32x8xf32> to vector<32x8xbf16>
    %26 = arith.extf %25 : vector<32x8xbf16> to vector<32x8xf32>
    %27 = arith.subf %24, %26 : vector<32x8xf32>
    %28 = arith.truncf %27 : vector<32x8xf32> to vector<32x8xbf16>
    %29 = arith.extf %28 : vector<32x8xbf16> to vector<32x8xf32>
    %30 = arith.subf %27, %29 : vector<32x8xf32>
    %31 = arith.truncf %30 : vector<32x8xf32> to vector<32x8xbf16>
    %c0_7 = arith.constant 0 : index
    %c0_8 = arith.constant 0 : index
    %32 = vector.load %arg1[%c0_7, %c0_8] : memref<1x256xi32, #tpu.memory_space<vmem>>, vector<1x256xi32>
    %33 = tpu.iota {dimensions = array<i32: 0>} : vector<64x256xi32>
    %34 = vector.broadcast %32 : vector<1x256xi32> to vector<64x256xi32>
    %35 = arith.cmpi eq, %33, %34 : vector<64x256xi32>
    %36 = arith.extui %35 : vector<64x256xi1> to vector<64x256xi32>
    %37 = arith.sitofp %36 : vector<64x256xi32> to vector<64x256xf32>
    %38 = arith.truncf %37 : vector<64x256xf32> to vector<64x256xbf16>
    %cst = arith.constant dense<0.000000e+00> : vector<32x256xf32>
    %39 = tpu.matmul %1, %38, %cst {dimension_numbers = #tpu.dot_dimension_numbers<[1], [0], [0], [1], [0, 0, 1, 1], [], []>} : vector<32x64xbf16>, vector<64x256xbf16>, vector<32x256xf32> -> vector<32x256xf32>
    %cst_9 = arith.constant dense<0.000000e+00> : vector<32x256xf32>
    %40 = tpu.matmul %4, %38, %cst_9 {dimension_numbers = #tpu.dot_dimension_numbers<[1], [0], [0], [1], [0, 0, 1, 1], [], []>} : vector<32x64xbf16>, vector<64x256xbf16>, vector<32x256xf32> -> vector<32x256xf32>
    %41 = arith.addf %39, %40 : vector<32x256xf32>
    %cst_10 = arith.constant dense<0.000000e+00> : vector<32x256xf32>
    %42 = tpu.matmul %7, %38, %cst_10 {dimension_numbers = #tpu.dot_dimension_numbers<[1], [0], [0], [1], [0, 0, 1, 1], [], []>} : vector<32x64xbf16>, vector<64x256xbf16>, vector<32x256xf32> -> vector<32x256xf32>
    %43 = arith.addf %41, %42 : vector<32x256xf32>
    %cst_11 = arith.constant dense<0.000000e+00> : vector<32x256xf32>
    %44 = tpu.matmul %9, %38, %cst_11 {dimension_numbers = #tpu.dot_dimension_numbers<[1], [0], [0], [1], [0, 0, 1, 1], [], []>} : vector<32x64xbf16>, vector<64x256xbf16>, vector<32x256xf32> -> vector<32x256xf32>
    %cst_12 = arith.constant dense<0.000000e+00> : vector<32x256xf32>
    %45 = tpu.matmul %12, %38, %cst_12 {dimension_numbers = #tpu.dot_dimension_numbers<[1], [0], [0], [1], [0, 0, 1, 1], [], []>} : vector<32x64xbf16>, vector<64x256xbf16>, vector<32x256xf32> -> vector<32x256xf32>
    %46 = arith.addf %44, %45 : vector<32x256xf32>
    %cst_13 = arith.constant dense<0.000000e+00> : vector<32x256xf32>
    %47 = tpu.matmul %15, %38, %cst_13 {dimension_numbers = #tpu.dot_dimension_numbers<[1], [0], [0], [1], [0, 0, 1, 1], [], []>} : vector<32x64xbf16>, vector<64x256xbf16>, vector<32x256xf32> -> vector<32x256xf32>
    %48 = arith.addf %46, %47 : vector<32x256xf32>
    %c0_14 = arith.constant 0 : index
    %c0_15 = arith.constant 0 : index
    %49 = vector.load %arg2[%c0_14, %c0_15] : memref<1x256xi32, #tpu.memory_space<vmem>>, vector<1x256xi32>
    %50 = tpu.iota {dimensions = array<i32: 0>} : vector<64x256xi32>
    %51 = vector.broadcast %49 : vector<1x256xi32> to vector<64x256xi32>
    %52 = arith.cmpi eq, %50, %51 : vector<64x256xi32>
    %53 = arith.extui %52 : vector<64x256xi1> to vector<64x256xi32>
    %54 = arith.sitofp %53 : vector<64x256xi32> to vector<64x256xf32>
    %55 = arith.truncf %54 : vector<64x256xf32> to vector<64x256xbf16>
    %cst_16 = arith.constant dense<0.000000e+00> : vector<32x256xf32>
    %56 = tpu.matmul %1, %55, %cst_16 {dimension_numbers = #tpu.dot_dimension_numbers<[1], [0], [0], [1], [0, 0, 1, 1], [], []>} : vector<32x64xbf16>, vector<64x256xbf16>, vector<32x256xf32> -> vector<32x256xf32>
    %cst_17 = arith.constant dense<0.000000e+00> : vector<32x256xf32>
    %57 = tpu.matmul %4, %55, %cst_17 {dimension_numbers = #tpu.dot_dimension_numbers<[1], [0], [0], [1], [0, 0, 1, 1], [], []>} : vector<32x64xbf16>, vector<64x256xbf16>, vector<32x256xf32> -> vector<32x256xf32>
    %58 = arith.addf %56, %57 : vector<32x256xf32>
    %cst_18 = arith.constant dense<0.000000e+00> : vector<32x256xf32>
    %59 = tpu.matmul %7, %55, %cst_18 {dimension_numbers = #tpu.dot_dimension_numbers<[1], [0], [0], [1], [0, 0, 1, 1], [], []>} : vector<32x64xbf16>, vector<64x256xbf16>, vector<32x256xf32> -> vector<32x256xf32>
    %60 = arith.addf %58, %59 : vector<32x256xf32>
    %cst_19 = arith.constant dense<0.000000e+00> : vector<32x256xf32>
    %61 = tpu.matmul %9, %55, %cst_19 {dimension_numbers = #tpu.dot_dimension_numbers<[1], [0], [0], [1], [0, 0, 1, 1], [], []>} : vector<32x64xbf16>, vector<64x256xbf16>, vector<32x256xf32> -> vector<32x256xf32>
    %cst_20 = arith.constant dense<0.000000e+00> : vector<32x256xf32>
    %62 = tpu.matmul %12, %55, %cst_20 {dimension_numbers = #tpu.dot_dimension_numbers<[1], [0], [0], [1], [0, 0, 1, 1], [], []>} : vector<32x64xbf16>, vector<64x256xbf16>, vector<32x256xf32> -> vector<32x256xf32>
    %63 = arith.addf %61, %62 : vector<32x256xf32>
    %cst_21 = arith.constant dense<0.000000e+00> : vector<32x256xf32>
    %64 = tpu.matmul %15, %55, %cst_21 {dimension_numbers = #tpu.dot_dimension_numbers<[1], [0], [0], [1], [0, 0, 1, 1], [], []>} : vector<32x64xbf16>, vector<64x256xbf16>, vector<32x256xf32> -> vector<32x256xf32>
    %65 = arith.addf %63, %64 : vector<32x256xf32>
    %c0_22 = arith.constant 0 : index
    %c0_23 = arith.constant 0 : index
    %66 = vector.load %arg3[%c0_22, %c0_23] : memref<1x256xi32, #tpu.memory_space<vmem>>, vector<1x256xi32>
    %67 = tpu.iota {dimensions = array<i32: 0>} : vector<8x256xi32>
    %68 = vector.broadcast %66 : vector<1x256xi32> to vector<8x256xi32>
    %69 = arith.cmpi eq, %67, %68 : vector<8x256xi32>
    %70 = arith.extui %69 : vector<8x256xi1> to vector<8x256xi32>
    %71 = arith.sitofp %70 : vector<8x256xi32> to vector<8x256xf32>
    %72 = arith.truncf %71 : vector<8x256xf32> to vector<8x256xbf16>
    %cst_24 = arith.constant dense<0.000000e+00> : vector<32x256xf32>
    %73 = tpu.matmul %17, %72, %cst_24 {dimension_numbers = #tpu.dot_dimension_numbers<[1], [0], [0], [1], [0, 0, 1, 1], [], []>} : vector<32x8xbf16>, vector<8x256xbf16>, vector<32x256xf32> -> vector<32x256xf32>
    %cst_25 = arith.constant dense<0.000000e+00> : vector<32x256xf32>
    %74 = tpu.matmul %20, %72, %cst_25 {dimension_numbers = #tpu.dot_dimension_numbers<[1], [0], [0], [1], [0, 0, 1, 1], [], []>} : vector<32x8xbf16>, vector<8x256xbf16>, vector<32x256xf32> -> vector<32x256xf32>
    %75 = arith.addf %73, %74 : vector<32x256xf32>
    %cst_26 = arith.constant dense<0.000000e+00> : vector<32x256xf32>
    %76 = tpu.matmul %23, %72, %cst_26 {dimension_numbers = #tpu.dot_dimension_numbers<[1], [0], [0], [1], [0, 0, 1, 1], [], []>} : vector<32x8xbf16>, vector<8x256xbf16>, vector<32x256xf32> -> vector<32x256xf32>
    %77 = arith.addf %75, %76 : vector<32x256xf32>
    %cst_27 = arith.constant dense<0.000000e+00> : vector<32x256xf32>
    %78 = tpu.matmul %25, %72, %cst_27 {dimension_numbers = #tpu.dot_dimension_numbers<[1], [0], [0], [1], [0, 0, 1, 1], [], []>} : vector<32x8xbf16>, vector<8x256xbf16>, vector<32x256xf32> -> vector<32x256xf32>
    %cst_28 = arith.constant dense<0.000000e+00> : vector<32x256xf32>
    %79 = tpu.matmul %28, %72, %cst_28 {dimension_numbers = #tpu.dot_dimension_numbers<[1], [0], [0], [1], [0, 0, 1, 1], [], []>} : vector<32x8xbf16>, vector<8x256xbf16>, vector<32x256xf32> -> vector<32x256xf32>
    %80 = arith.addf %78, %79 : vector<32x256xf32>
    %cst_29 = arith.constant dense<0.000000e+00> : vector<32x256xf32>
    %81 = tpu.matmul %31, %72, %cst_29 {dimension_numbers = #tpu.dot_dimension_numbers<[1], [0], [0], [1], [0, 0, 1, 1], [], []>} : vector<32x8xbf16>, vector<8x256xbf16>, vector<32x256xf32> -> vector<32x256xf32>
    %82 = arith.addf %80, %81 : vector<32x256xf32>
    %83 = arith.mulf %77, %60 : vector<32x256xf32>
    %84 = arith.mulf %82, %65 : vector<32x256xf32>
    %85 = arith.subf %83, %84 : vector<32x256xf32>
    %86 = arith.mulf %43, %85 : vector<32x256xf32>
    %87 = arith.mulf %82, %60 : vector<32x256xf32>
    %88 = arith.mulf %77, %65 : vector<32x256xf32>
    %89 = arith.addf %87, %88 : vector<32x256xf32>
    %90 = arith.mulf %48, %89 : vector<32x256xf32>
    %91 = arith.subf %86, %90 : vector<32x256xf32>
    %cst_30 = arith.constant dense<0.000000e+00> : vector<256xf32>
    %92 = vector.multi_reduction <add>, %91, %cst_30 [0] : vector<32x256xf32> to vector<256xf32>
    %93 = vector.shape_cast %92 : vector<256xf32> to vector<1x256xf32>
    %c0_31 = arith.constant 0 : index
    %c0_32 = arith.constant 0 : index
    %94 = vector.load %arg8[%c0_31, %c0_32] : memref<1x256xf32, #tpu.memory_space<vmem>>, vector<1x256xf32>
    tpu.vector_store %arg8[%c0_31, %c0_32], %93 {strides = array<i32>} : memref<1x256xf32, #tpu.memory_space<vmem>>, vector<1x256xf32>,
    return
  }
  func.func @transform_0(%arg0: i32) -> (i32, i32) {
    %c0_i32 = arith.constant 0 : i32
    %c0_i32_0 = arith.constant 0 : i32
    return %c0_i32, %arg0 : i32, i32
  }
  func.func @transform_1(%arg0: i32) -> (i32, i32) {
    %c0_i32 = arith.constant 0 : i32
    %c0_i32_0 = arith.constant 0 : i32
    return %c0_i32, %arg0 : i32, i32
  }
  func.func @transform_2(%arg0: i32) -> (i32, i32) {
    %c0_i32 = arith.constant 0 : i32
    %c0_i32_0 = arith.constant 0 : i32
    return %c0_i32, %arg0 : i32, i32
  }
  func.func @transform_3(%arg0: i32) -> (i32, i32) {
    %c0_i32 = arith.constant 0 : i32
    %c0_i32_0 = arith.constant 0 : i32
    %c0_i32_1 = arith.constant 0 : i32
    return %c0_i32, %c0_i32_0 : i32, i32
  }
  func.func @transform_4(%arg0: i32) -> (i32, i32) {
    %c0_i32 = arith.constant 0 : i32
    %c0_i32_0 = arith.constant 0 : i32
    %c0_i32_1 = arith.constant 0 : i32
    return %c0_i32, %c0_i32_0 : i32, i32
  }
  func.func @transform_5(%arg0: i32) -> (i32, i32) {
    %c0_i32 = arith.constant 0 : i32
    %c0_i32_0 = arith.constant 0 : i32
    %c0_i32_1 = arith.constant 0 : i32
    return %c0_i32, %c0_i32_0 : i32, i32
  }
  func.func @transform_6(%arg0: i32) -> (i32, i32) {
    %c0_i32 = arith.constant 0 : i32
    %c0_i32_0 = arith.constant 0 : i32
    %c0_i32_1 = arith.constant 0 : i32
    return %c0_i32, %c0_i32_0 : i32, i32
  }
  func.func @transform_7(%arg0: i32) -> (i32, i32) {
    %c0_i32 = arith.constant 0 : i32
    %c0_i32_0 = arith.constant 0 : i32
    return %c0_i32, %arg0 : i32, i32
  }
}

</mosaic_0001>

<bundles_post_ra>
// kernel: tpu_custom_call.1
= control target key start
LH: loop header
LB: loop body
LE: loop exit
PB: predicated region body
PF: predicated region fallthrough
CT: control target
= control target key end

     0   :  { %s3397_s0 = inlined_call_operand.vmem [shape: s32[1,1024], index: 0, kind: input, shape index: {}]   ;;  %s3398_s1 = inlined_call_operand.hbm [shape: s32[1,1024], index: 1, kind: input, shape index: {}]   ;;  %s3399_s2 = inlined_call_operand.hbm [shape: s32[1,1024], index: 2, kind: input, shape index: {}]   ;;  %s3400_s3 = inlined_call_operand.vmem [shape: f32[32,64], index: 3, kind: input, shape index: {}]   ;;  %s3401_s4 = inlined_call_operand.vmem [shape: f32[32,64], index: 4, kind: input, shape index: {}]   ;;  %s3402_s5 = inlined_call_operand.vmem [shape: f32[32,8], index: 5, kind: input, shape index: {}]   ;;  %s3403_s6 = inlined_call_operand.vmem [shape: f32[32,8], index: 6, kind: input, shape index: {}]   ;;  %s3404_s7 = inlined_call_operand.hbm [shape: f32[1,1024], index: 7, kind: output, shape index: {}]  }
   0x1   :  { %3411 = sst [smem:[#allocation24_spill]] %s3398_s1 }
   0x2   :  { %12 = vsyncpa [#allocation3], 0 }
   0x3   :  { %14 = vsyncpa [#allocation3 + $0x1], 0 }
   0x4   :  { %15 = vsyncpa [#allocation6], 0 }
   0x5   :  { %17 = vsyncpa [#allocation6 + $0x1], 0 }
   0x6   :  { %18 = vsyncpa [#allocation4], 0 }
   0x7   :  { %20 = vsyncpa [#allocation4 + $0x1], 0  ;;  %s2269_s24 = smov 0   ;;  %s2271_s25 = smov 0  }
   0x8   :  { %s2273_s26 = smov 0   ;;  %s2275_s27 = smov 0  }
   0x9 LB: > { %3412 = sst [smem:[#allocation11_spill]] %s2221_s26  ;;  %s2290_s28 = sadd.s32 4294967295, %s2225_s27   ;;  %s2225_s27 = sphi %s2275_s27, %s3475_s27   ;;  %s2221_s26 = sphi %s2273_s26, %s3477_s26   ;;  %s2217_s25 = sphi %s2271_s25, %s3479_s25   ;;  %s2213_s24 = sphi %s2269_s24, %s3478_s24  }
   0xa   : > { %s1728_s29 = sadd.s32 4294967294, %s2225_s27   ;;  %s2294_s30 = sadd.s32 1, %s2225_s27  }
   0xb   : > { %3413 = sst [smem:[#allocation12_spill]] %s2294_s30  ;;  %s59_s8 = sadd.s32 1, %s2221_s26 }
   0xc   : > { %s56_s9 = ssub.s32 %s2225_s27, %s2294_s30  ;;  %p66_p0 = scmp.ne.s32.totalorder %s2221_s26, %s2217_s25 }
   0xd   : > { %p57_p1 = scmp.eq.s32.totalorder %s56_s9, 0  ;;  %p67_p2 = scmp.eq.s32.totalorder %s2225_s27, 0 }
   0xe   : > { %p72_p3 = scmp.ne.s32.totalorder %s2217_s25, %s2213_s24  ;;  %p73_p4 = scmp.eq.s32.totalorder %s2290_s28, 0 }
   0xf   : > { %s2306_s10 = scalar_select %p57_p1, %s2221_s26, %s59_s8  }
  0x10   : > { %p2308_p5 = por %p67_p2, %p66_p0  ;;  %p2312_p6 = por %p73_p4, %p72_p3 }
  0x11   : > { %3414 = sst [smem:[#allocation13_spill]] %s2306_s10  ;;  %p206_p7 = scmp.eq.s32.totalorder %s2290_s28, 3 }
  0x12   : > { %p212_p8 = scmp.eq.s32.totalorder %s1728_s29, 3  ;;  %p2059_p9 = scmp.lt.s32.totalorder %s2225_s27, 4 }
  0x13   : > { %p2318_p10 = por %p206_p7, %p66_p0  ;;  %s2327_s15 = sand.u32 1, %s2221_s26  }
  0x14   : > { %p2322_p11 = por %p212_p8, %p72_p3  ;;  %s1732_s16 = sshll.u32 %s2225_s27, 1 }
  0x15   : > { %s1731_s17 = sshll.u32 %s2327_s15, 1  ;;  %s3419_s1 = sld [smem:[#allocation24_spill]] }
  0x16   : > { %s256_s22 = scalar_lea.vmem [#allocation2], %s1731_s17  ;;  %p2336_p12 = pnand %p2059_p9, %p2308_p5 }
  0x17   : > { %s264_s23 = sshll.u32 %s256_s22, 4  ;;  %p1735_p13 = scmp.ge.s32.totalorder %s2225_s27, 1  ;;  %s265_s23 = int_to_ptr.vmem [resolvable:$true] %s264_s23 }
  0x18   : > { %p288_p0 = scmp.lt.s32.totalorder %s2225_s27, 5  ;;  %s253_s8 = scalar_lea.sflag [#allocation3], %s2327_s15 }
  0x19   : > { %p2099_p2 = pneg %p2336_p12 }
  0x1b   : > { %s260_s20 = scalar_lea.hbm %s3419_s1, %s1732_s16  ;;  %s2102_s19 = scalar_lea.hbm %s3419_s1, 8 }
  0x1c   : > { %s262_s21 = sshll.u32 %s260_s20, 4  ;;  %s263_s21 = int_to_ptr.hbm [resolvable:$true] %s262_s21 }
  0x1d   : > { %s2095_s9 = sshra.s32 %s263_s21, 4  ;;  %s2096_s9 = int_to_ptr.hbm [resolvable:$true] %s2095_s9 }
  0x1e   : > { %s2097_s10 = scalar_lea.hbm %s2096_s9, 2  ;;  %p2103_p5 = scmp.lt.s32.totalorder %s2096_s9, %s3419_s1 }
  0x1f   : > { %p2098_p1 = scmp.ne.s32.totalorder %s2096_s9, %s2097_s10  ;;  %p2104_p7 = scmp.lt.s32.totalorder %s2102_s19, %s2097_s10 }
  0x21   : > { %p2100_p3 = pnand %p2099_p2, %p2098_p1  ;;  %p2105_p8 = por %p2104_p7, %p2103_p5 }
  0x23   : > { %p2101_p4 = pneg %p2100_p3 }
  0x25   : > { %p2106_p9 = pnand %p2105_p8, %p2101_p4 }
  0x27   : > { %2109 = shalt.err (!%p2106_p9)
}
  0x28   : > { %2051 = dma.hbm_to_vmem [thread:$0]  (!%p2336_p12), %s263_s21, 32, %s265_s23, %s253_s8  }
  0x29   : > { %p2360_p1 = pnand %p1735_p13, %p288_p0  ;;  %s279_s10 = scalar_lea.hbm %s3399_s2, %s1732_s16 }
  0x2a   : > { %s281_s9 = sshll.u32 %s279_s10, 4  ;;  %s275_s19 = scalar_lea.vmem [#allocation5], %s1731_s17  ;;  %s282_s9 = int_to_ptr.hbm [resolvable:$true] %s281_s9 }
  0x2b   : > { %s283_s22 = sshll.u32 %s275_s19, 4  ;;  %s272_s1 = scalar_lea.sflag [#allocation6], %s2327_s15  ;;  %s284_s22 = int_to_ptr.vmem [resolvable:$true] %s283_s22 }
  0x2c   : > { %s2125_s26 = sshra.s32 %s282_s9, 4  ;;  %s2132_s8 = scalar_lea.hbm %s3399_s2, 8  ;;  %s2126_s26 = int_to_ptr.hbm [resolvable:$true] %s2125_s26 }
  0x2d   : > { %s2127_s30 = scalar_lea.hbm %s2126_s26, 2  ;;  %p2133_p4 = scmp.lt.s32.totalorder %s2126_s26, %s3399_s2 }
  0x2e   : > { %p2128_p3 = scmp.ne.s32.totalorder %s2126_s26, %s2127_s30  ;;  %p2134_p5 = scmp.lt.s32.totalorder %s2132_s8, %s2127_s30 }
  0x30   : > { %p2130_p13 = pnand %p2128_p3, %p2099_p2  ;;  %p2135_p7 = por %p2134_p5, %p2133_p4 }
  0x32   : > { %p2131_p0 = pneg %p2130_p13 }
  0x34   : > { %p2136_p8 = pnand %p2135_p7, %p2131_p0 }
  0x36   : > { %2139 = shalt.err (!%p2136_p8)
}
  0x37   : > { %2054 = dma.hbm_to_vmem [thread:$0]  (!%p2336_p12), %s282_s9, 32, %s284_s22, %s272_s1  }
  0x38   : > { %292 = sbr.rel (%p2360_p1) target bundleno = 538 (0x21a), region = 48 }
  0x3d   : > { %s2382_s15 = sand.u32 1, %s2217_s25  }
  0x3e   : > { %s2385_s17 = sshll.u32 %s2382_s15, 1  ;;  %s295_s26 = scalar_lea.sflag [#allocation3], %s2382_s15 }
  0x3f   : > { %s298_s30 = scalar_lea.vmem [#allocation2], %s2385_s17 }
  0x40   : > { %2200 = dma.done.wait (%p2312_p6), %s295_s26, 32  }
  0x41   : > { %2202 = vsyncadd (%p2312_p6), %s295_s26, 4294967264  ;;  %s305_s1 = scalar_lea.sflag [#allocation6], %s2382_s15  ;;  %s308_s29 = scalar_lea.vmem [#allocation5], %s2385_s17 }
  0x42   : > { %2204 = dma.done.wait (%p2312_p6), %s305_s1, 32  }
  0x43   : > { %2206 = vsyncadd (%p2312_p6), %s305_s1, 4294967264  ;;  %s2400_s11 = sshll.u32 %s2290_s28, 1  ;;  %v3408_v0 = vlaneseq  ;;  %v358_v7 = vld [vmem:[%s3400_s3] sm:$0xff]  ;;  %v359_v8 = vld [vmem:[%s3400_s3 + $0x8] sm:$0xff]  ;;  %v2227_v16 = vmov 1.0|1.0  }
  0x44   : > { %p350_p12 = scmp.lt.s32.totalorder %s2400_s11, 7  ;;  %v362_v11 = vpack.c.bf16 %v358_v7, %v358_v7  ;;  %v363_v14 = vpack.c.bf16 %v359_v8, %v359_v8  ;;  %v360_v24 = vld [vmem:[%s3400_s3 + $0x10] sm:$0xff]  ;;  %v361_v25 = vld [vmem:[%s3400_s3 + $0x18] sm:$0xff]  ;;  %v388_v47 = vld [vmem:[%s3401_s4] sm:$0xff]  ;;  %s1621_s22 = scalar_lea.hbm %s3404_s7, %s2400_s11 }
  0x45   : > { %v2404_v1 = vshrl.u32 %v3408_v0, 7  ;;  %v364_v30 = vpack.c.bf16 %v360_v24, %v360_v24  ;;  %v365_v31 = vpack.c.bf16 %v361_v25, %v361_v25  ;;  %v389_v48 = vld [vmem:[%s3401_s4 + $0x8] sm:$0xff]  ;;  %v2615_v53 = vpack.c.bf16 %v388_v47, %v388_v47  ;;  %s348_s21 = scalar_lea.vmem [#allocation7], %s2385_s17  ;;  %s1625_s8 = sshll.u32 %s1621_s22, 4  ;;  %s1626_s8 = int_to_ptr.hbm [resolvable:$true] %s1625_s8 }
  0x46   : > { %s351_s20 = scalar_select %p350_p12, %s2400_s11, 7  ;;  %v366_v18 = vunpack.c.l.bf16 %v362_v11  ;;  %v367_v20 = vunpack.c.l.bf16 %v363_v14  ;;  %v605_v35 = vunpack.c.l.b16 %v362_v11  ;;  %v606_v36 = vunpack.c.l.b16 %v363_v14 }
  0x47   : > { %v2411_v2 = vadd.s32 48, %v2404_v1  ;;  %v2414_v3 = vadd.s32 56, %v2404_v1  ;;  %v2417_v5 = vadd.s32 32, %v2404_v1  ;;  %v2420_v6 = vadd.s32 40, %v2404_v1  ;;  %s1623_s23 = sshll.u32 %s348_s21, 4  ;;  %s1611_s18 = scalar_lea.sflag [#allocation4], %s2382_s15  ;;  %s1624_s23 = int_to_ptr.vmem [resolvable:$true] %s1623_s23 }
  0x48   : > { %s352_s19 = scalar_lea.vmem %s3397_s0, %s351_s20  ;;  %v2429_v12 = vadd.s32 16, %v2404_v1  ;;  %v2432_v13 = vadd.s32 24, %v2404_v1  ;;  %v2473_v22 = vadd.s32 8, %v2404_v1  ;;  %v2475_v23 = vsub.f32 %v358_v7, %v366_v18  ;;  %v390_v7 = vld [vmem:[%s3401_s4 + $0x10] sm:$0xff]  ;;  %s2169_s16 = sshra.s32 %s1626_s8, 4  ;;  %s2170_s16 = int_to_ptr.hbm [resolvable:$true] %s2169_s16 }
  0x49   : > { %v478_v4 = vld [vmem:[%s352_s19] sm:$0x3]  ;;  %v2485_v26 = vsub.f32 %v359_v8, %v367_v20  ;;  %v2543_v40 = vpack.c.b16 %v606_v36, %v605_v35  ;;  %v368_v41 = vunpack.c.l.bf16 %v364_v30  ;;  %v369_v42 = vunpack.c.l.bf16 %v365_v31  ;;  %v391_v8 = vld [vmem:[%s3401_s4 + $0x18] sm:$0xff]  ;;  %s2171_s11 = scalar_lea.hbm %s2170_s16, 2  ;;  %s2175_s1 = scalar_lea.hbm %s3404_s7, 8 }
  0x4a   : > { %v488_v9 = vperm.slane %v478_v4, 0  ;;  %v489_v10 = vperm.slane %v478_v4, 1  ;;  %v2495_v27 = vpack.c.bf16 %v2475_v23, %v2475_v23  ;;  %v607_v49 = vunpack.c.l.b16 %v364_v30  ;;  %p2172_p6 = scmp.ne.s32.totalorder %s2170_s16, %s2171_s11  ;;  %p2176_p1 = scmp.lt.s32.totalorder %s2170_s16, %s3404_s7 }
  0x4b   : > { %v2509_v29 = vpack.c.bf16 %v2485_v26, %v2485_v26  ;;  %v2567_v43 = vsub.f32 %v360_v24, %v368_v41  ;;  %v2569_v44 = vsub.f32 %v361_v25, %v369_v42  ;;  %v608_v50 = vunpack.c.l.b16 %v365_v31  ;;  %v867_v25 = vld [vmem:[%s298_s30] sm:$0x3]  ;;  %p2177_p3 = scmp.lt.s32.totalorder %s2175_s1, %s2171_s11 }
  0x4c   : > { %vm502_vm0 = vcmp.eq.s32.totalorder %v2411_v2, %v488_v9  ;;  %vm504_vm1 = vcmp.eq.s32.totalorder %v2414_v3, %v488_v9  ;;  %vm503_vm2 = vcmp.eq.s32.totalorder %v2411_v2, %v489_v10  ;;  %vm505_vm3 = vcmp.eq.s32.totalorder %v2414_v3, %v489_v10  ;;  %p2173_p2 = pnand %p2172_p6, %p2318_p10 }
  0x4d   : > { %vm2438_vm4 = vmpackc.low %vm504_vm1, %vm502_vm0  ;;  %vm498_vm5 = vcmp.eq.s32.totalorder %v2417_v5, %v488_v9  ;;  %vm500_vm6 = vcmp.eq.s32.totalorder %v2420_v6, %v488_v9  ;;  %vm499_vm7 = vcmp.eq.s32.totalorder %v2417_v5, %v489_v10  ;;  %vm501_vm8 = vcmp.eq.s32.totalorder %v2420_v6, %v489_v10  ;;  %p2178_p13 = por %p2177_p3, %p2176_p1 }
  0x4e   : > { %1757 = vmatpush.bf16.msk.msra.mxu0 %vm2438_vm4, %v2227_v16  ;;  %vm2449_vm9 = vmpackc.low %vm505_vm3, %vm503_vm2  ;;  %1777 = vmatpush.bf16.msk.msra.mxu2 %vm2438_vm4, %v2227_v16  ;;  %vm494_vm12 = vcmp.eq.s32.totalorder %v2429_v12, %v488_v9  ;;  %vm496_vm13 = vcmp.eq.s32.totalorder %v2432_v13, %v488_v9  ;;  %vm495_vm14 = vcmp.eq.s32.totalorder %v2429_v12, %v489_v10  ;;  %v550_v33 = vunpack.c.l.b16 %v2495_v27  ;;  %p2174_p9 = pneg %p2173_p2 }
  0x4f   : > { %1767 = vmatpush.bf16.msk.msra.mxu1 %vm2449_vm9, %v2227_v16  ;;  %1787 = vmatpush.bf16.msk.msra.mxu3 %vm2449_vm9, %v2227_v16  ;;  %vm2462_vm10 = vmpackc.low %vm500_vm6, %vm498_vm5  ;;  %vm497_vm15 = vcmp.eq.s32.totalorder %v2432_v13, %v489_v10  ;;  %vm490_vm2 = vcmp.eq.s32.totalorder %v2404_v1, %v488_v9  ;;  %vm492_vm3 = vcmp.eq.s32.totalorder %v2473_v22, %v488_v9  ;;  %v551_v34 = vunpack.c.l.b16 %v2509_v29 }
  0x50   : > { %vm2466_vm11 = vmpackc.low %vm501_vm8, %vm499_vm7  ;;  %vm491_vm5 = vcmp.eq.s32.totalorder %v2404_v1, %v489_v10  ;;  %vm493_vm6 = vcmp.eq.s32.totalorder %v2473_v22, %v489_v10  ;;  %v2589_v45 = vpack.c.bf16 %v2567_v43, %v2567_v43  ;;  %v2593_v46 = vpack.c.bf16 %v2569_v44, %v2569_v44  ;;  %p2179_p0 = pnand %p2178_p13, %p2174_p9 }
  0x51   : > { %vm2503_vm0 = vmpackc.low %vm496_vm13, %vm494_vm12  ;;  %v2541_v39 = vpack.c.b16 %v551_v34, %v550_v33  ;;  %vm556_vm12 = vcmask 523264   ;;  %v2617_v54 = vpack.c.bf16 %v389_v48, %v389_v48  ;;  %v2633_v56 = vpack.c.b16 %v608_v50, %v607_v49 }
  0x52   : > { %1759 = vmatpush.bf16.msk.msra.mxu0 %vm2462_vm10, %v2227_v16  ;;  %1779 = vmatpush.bf16.msk.msra.mxu2 %vm2462_vm10, %v2227_v16  ;;  %vm2511_vm1 = vmpackc.low %vm497_vm15, %vm495_vm14  ;;  %v552_v51 = vunpack.c.l.b16 %v2589_v45  ;;  %v553_v52 = vunpack.c.l.b16 %v2593_v46  ;;  %v396_v57 = vunpack.c.l.bf16 %v2615_v53  ;;  %v378_v61 = vunpack.c.l.bf16 %v2495_v27 }
  0x53   : > { %1769 = vmatpush.bf16.msk.msra.mxu1 %vm2466_vm11, %v2227_v16  ;;  %1789 = vmatpush.bf16.msk.msra.mxu3 %vm2466_vm11, %v2227_v16  ;;  %vm2533_vm7 = vmpackc.low %vm492_vm3, %vm490_vm2  ;;  %v397_v58 = vunpack.c.l.bf16 %v2617_v54  ;;  %v379_v62 = vunpack.c.l.bf16 %v2509_v29  ;;  %v2701_v9 = vpack.c.bf16 %v390_v7, %v390_v7  ;;  %v2703_v10 = vpack.c.bf16 %v391_v8, %v391_v8 }
  0x54   : > { %vm2537_vm8 = vmpackc.low %vm493_vm6, %vm491_vm5  ;;  %v2631_v55 = vpack.c.b16 %v553_v52, %v552_v51  ;;  %v2659_v59 = vsub.f32 %v388_v47, %v396_v57  ;;  %v382_v11 = vsub.f32 %v2475_v23, %v378_v61  ;;  %v868_v27 = vperm.slane %v867_v25, 0 }
  0x55   : > { %v2661_v60 = vsub.f32 %v389_v48, %v397_v58  ;;  %v383_v14 = vsub.f32 %v2485_v26, %v379_v62  ;;  %v398_v18 = vunpack.c.l.bf16 %v2701_v9  ;;  %v399_v19 = vunpack.c.l.bf16 %v2703_v10 }
  0x56   : > { %1761 = vmatpush.bf16.msk.msra.mxu0 %vm2503_vm0, %v2227_v16  ;;  %1781 = vmatpush.bf16.msk.msra.mxu2 %vm2503_vm0, %v2227_v16  ;;  %v2683_v63 = vpack.c.bf16 %v2659_v59, %v2659_v59  ;;  %v869_v26 = vperm.slane %v867_v25, 1  ;;  %v380_v28 = vunpack.c.l.bf16 %v2589_v45  ;;  %v381_v29 = vunpack.c.l.bf16 %v2593_v46 }
  0x57   : > { %1771 = vmatpush.bf16.msk.msra.mxu1 %vm2511_vm1, %v2227_v16  ;;  %1791 = vmatpush.bf16.msk.msra.mxu3 %vm2511_vm1, %v2227_v16  ;;  %v2687_v4 = vpack.c.bf16 %v2661_v60, %v2661_v60  ;;  %v2729_v20 = vpack.c.bf16 %v383_v14, %v382_v11  ;;  %v2733_v23 = vsub.f32 %v390_v7, %v398_v18  ;;  %v767_v51 = vunpack.c.l.b16 %v2701_v9 }
  0x58   : > { %v711_v15 = vunpack.c.l.b16 %v2683_v63  ;;  %v2735_v24 = vsub.f32 %v391_v8, %v399_v19  ;;  %vm879_vm14 = vcmp.eq.s32.totalorder %v2417_v5, %v869_v26  ;;  %vm881_vm15 = vcmp.eq.s32.totalorder %v2420_v6, %v869_v26 }
  0x59   : > { %v712_v17 = vunpack.c.l.b16 %v2687_v4  ;;  %v2751_v30 = vpack.c.bf16 %v2733_v23, %v2733_v23  ;;  %vm2785_vm3 = vmpackc.low %vm881_vm15, %vm879_vm14  ;;  %vm875_vm6 = vcmp.eq.s32.totalorder %v2429_v12, %v869_v26  ;;  %vm870_vm14 = vcmp.eq.s32.totalorder %v2404_v1, %v868_v27 }
  0x5a   : > { %1763 = vmatpush.bf16.msk.msra.mxu0 %vm2533_vm7, %v2227_v16  ;;  %1783 = vmatpush.bf16.msk.msra.mxu2 %vm2533_vm7, %v2227_v16  ;;  %v2755_v31 = vpack.c.bf16 %v2735_v24, %v2735_v24  ;;  %v768_v52 = vunpack.c.l.b16 %v2703_v10 }
  0x5b   : > { %1773 = vmatpush.bf16.msk.msra.mxu1 %vm2537_vm8, %v2227_v16  ;;  %1793 = vmatpush.bf16.msk.msra.mxu3 %vm2537_vm8, %v2227_v16  ;;  %v2731_v21 = vpack.c.b16 %v712_v17, %v711_v15  ;;  %v713_v33 = vunpack.c.l.b16 %v2751_v30  ;;  %v410_v49 = vunpack.c.l.bf16 %v2751_v30 }
  0x5c   : > { %v714_v34 = vunpack.c.l.b16 %v2755_v31  ;;  %v411_v50 = vunpack.c.l.bf16 %v2755_v31  ;;  %v2929_v57 = vpack.c.b16 %v768_v52, %v767_v51 }
  0x5d   : > { %1764 = vmatmul.msk.bf16.vlgmr.msra.gmra.mxu0 %vm556_vm12, %v2541_v39  ;;  %1784 = vmatmul.msk.bf16.vlgmr.msra.gmra.mxu2 %vm556_vm12, %v2543_v40 }
  0x5e   : > { %1817 = vmatpush.bf16.msk.msrb.mxu2 %vm2438_vm4, %v2227_v16  ;;  %1774 = vmatmul.msk.bf16.vlgmr.msra.gmra.mxu1 %vm556_vm12, %v2541_v39  ;;  %v2811_v37 = vpack.c.b16 %v714_v34, %v713_v33 }
  0x5f   : > { %1827 = vmatpush.bf16.msk.msrb.mxu3 %vm2449_vm9, %v2227_v16  ;;  %1807 = vmatpush.bf16.msk.msrb.mxu1 %vm2449_vm9, %v2227_v16 }
  0x60   : > { %1794 = vmatmul.msk.bf16.vlgmr.msra.gmra.mxu3 %vm556_vm12, %v2543_v40  ;;  %1797 = vmatpush.bf16.msk.msrb.mxu0 %vm2438_vm4, %v2227_v16 }
  0x62   : > { %1819 = vmatpush.bf16.msk.msrb.mxu2 %vm2462_vm10, %v2227_v16 }
  0x63   : > { %1829 = vmatpush.bf16.msk.msrb.mxu3 %vm2466_vm11, %v2227_v16  ;;  %1809 = vmatpush.bf16.msk.msrb.mxu1 %vm2466_vm11, %v2227_v16 }
  0x64   : > { %1799 = vmatpush.bf16.msk.msrb.mxu0 %vm2462_vm10, %v2227_v16 }
  0x66   : > { %1821 = vmatpush.bf16.msk.msrb.mxu2 %vm2503_vm0, %v2227_v16 }
  0x67   : > { %1831 = vmatpush.bf16.msk.msrb.mxu3 %vm2511_vm1, %v2227_v16  ;;  %1811 = vmatpush.bf16.msk.msrb.mxu1 %vm2511_vm1, %v2227_v16 }
  0x68   : > { %1801 = vmatpush.bf16.msk.msrb.mxu0 %vm2503_vm0, %v2227_v16 }
  0x6a   : > { %1823 = vmatpush.bf16.msk.msrb.mxu2 %vm2533_vm7, %v2227_v16 }
  0x6b   : > { %1833 = vmatpush.bf16.msk.msrb.mxu3 %vm2537_vm8, %v2227_v16  ;;  %1813 = vmatpush.bf16.msk.msrb.mxu1 %vm2537_vm8, %v2227_v16 }
  0x6c   : > { %1803 = vmatpush.bf16.msk.msrb.mxu0 %vm2533_vm7, %v2227_v16 }
  0x6d   : > { %1765 = vmatmul.msk.bf16.gmra.mxu0 %vm556_vm12, %v2631_v55  ;;  %1785 = vmatmul.msk.bf16.gmra.mxu2 %vm556_vm12, %v2633_v56 }
  0x6e   : > { %1857 = vmatpush.bf16.msk.msra.mxu2 %vm2438_vm4, %v2227_v16  ;;  %1775 = vmatmul.msk.bf16.gmra.mxu1 %vm556_vm12, %v2631_v55 }
  0x6f   : > { %1867 = vmatpush.bf16.msk.msra.mxu3 %vm2449_vm9, %v2227_v16  ;;  %1847 = vmatpush.bf16.msk.msra.mxu1 %vm2449_vm9, %v2227_v16  ;;  %vm885_vm9 = vcmp.eq.s32.totalorder %v2414_v3, %v869_v26 }
  0x70   : > { %1837 = vmatpush.bf16.msk.msra.mxu0 %vm2438_vm4, %v2227_v16  ;;  %1795 = vmatmul.msk.bf16.gmra.mxu3 %vm556_vm12, %v2633_v56  ;;  %vm883_vm4 = vcmp.eq.s32.totalorder %v2411_v2, %v869_v26 }
  0x71   : > { %vm2761_vm13 = vmpackc.low %vm885_vm9, %vm883_vm4  ;;  %vm876_vm9 = vcmp.eq.s32.totalorder %v2432_v13, %v868_v27 }
  0x72   : > { %1859 = vmatpush.bf16.msk.msra.mxu2 %vm2462_vm10, %v2227_v16 }
  0x73   : > { %1869 = vmatpush.bf16.msk.msra.mxu3 %vm2466_vm11, %v2227_v16  ;;  %1849 = vmatpush.bf16.msk.msra.mxu1 %vm2466_vm11, %v2227_v16  ;;  %vm884_vm11 = vcmp.eq.s32.totalorder %v2414_v3, %v868_v27 }
  0x74   : > { %1839 = vmatpush.bf16.msk.msra.mxu0 %vm2462_vm10, %v2227_v16  ;;  %vm882_vm10 = vcmp.eq.s32.totalorder %v2411_v2, %v868_v27 }
  0x75   : > { %vm2772_vm2 = vmpackc.low %vm884_vm11, %vm882_vm10  ;;  %vm871_vm10 = vcmp.eq.s32.totalorder %v2404_v1, %v869_v26  ;;  %vm873_vm11 = vcmp.eq.s32.totalorder %v2473_v22, %v869_v26 }
  0x76   : > { %1861 = vmatpush.bf16.msk.msra.mxu2 %vm2503_vm0, %v2227_v16 }
  0x77   : > { %1871 = vmatpush.bf16.msk.msra.mxu3 %vm2511_vm1, %v2227_v16  ;;  %1851 = vmatpush.bf16.msk.msra.mxu1 %vm2511_vm1, %v2227_v16  ;;  %vm880_vm1 = vcmp.eq.s32.totalorder %v2420_v6, %v868_v27  ;;  %v385_v6 = vsub.f32 %v2569_v44, %v381_v29  ;;  %v766_v44 = vunpack.c.l.b16 %v2617_v54  ;;  %v415_v54 = vsub.f32 %v2735_v24, %v411_v50 }
  0x78   : > { %1841 = vmatpush.bf16.msk.msra.mxu0 %vm2503_vm0, %v2227_v16  ;;  %vm878_vm0 = vcmp.eq.s32.totalorder %v2417_v5, %v868_v27  ;;  %v384_v5 = vsub.f32 %v2567_v43, %v380_v28 }
  0x79   : > { %vm2793_vm5 = vmpackc.low %vm880_vm1, %vm878_vm0  ;;  %vm872_vm0 = vcmp.eq.s32.totalorder %v2473_v22, %v868_v27  ;;  %v765_v22 = vunpack.c.l.b16 %v2615_v53  ;;  %v414_v53 = vsub.f32 %v2733_v23, %v410_v49 }
  0x7a   : > { %1863 = vmatpush.bf16.msk.msra.mxu2 %vm2533_vm7, %v2227_v16  ;;  %v2809_v36 = vpack.c.bf16 %v385_v6, %v384_v5  ;;  %vm2851_vm1 = vmpackc.low %vm873_vm11, %vm871_vm10 }
  0x7b   : > { %1873 = vmatpush.bf16.msk.msra.mxu3 %vm2537_vm8, %v2227_v16  ;;  %1853 = vmatpush.bf16.msk.msra.mxu1 %vm2537_vm8, %v2227_v16  ;;  %vm874_vm8 = vcmp.eq.s32.totalorder %v2429_v12, %v868_v27  ;;  %v408_v12 = vunpack.c.l.bf16 %v2683_v63  ;;  %v2875_v47 = vpack.c.b16 %v766_v44, %v765_v22  ;;  %v2931_v58 = vpack.c.bf16 %v415_v54, %v414_v53 }
  0x7c   : > { %1843 = vmatpush.bf16.msk.msra.mxu0 %vm2533_vm7, %v2227_v16  ;;  %vm877_vm7 = vcmp.eq.s32.totalorder %v2432_v13, %v869_v26  ;;  %vm2835_vm15 = vmpackc.low %vm876_vm9, %vm874_vm8  ;;  %v409_v13 = vunpack.c.l.bf16 %v2687_v4  ;;  %v2228_v4 = vmov 0.0  }
  0x7d   : > { %1804 = vmatmul.msk.bf16.vlgmr.msrb.gmra.mxu0 %vm556_vm12, %v2729_v20  ;;  %1824 = vmatmul.msk.bf16.vlgmr.msrb.gmra.mxu2 %vm556_vm12, %v2731_v21  ;;  %vm2824_vm4 = vmpackc.low %vm877_vm7, %vm875_vm6  ;;  %v412_v45 = vsub.f32 %v2659_v59, %v408_v12 }
  0x7e   : > { %1814 = vmatmul.msk.bf16.vlgmr.msrb.gmra.mxu1 %vm556_vm12, %v2729_v20  ;;  %1913 = vmatpush.bf16.msk.msrb.mxu2 %vm2772_vm2, %v2227_v16  ;;  %vm2855_vm6 = vmpackc.low %vm872_vm0, %vm870_vm14  ;;  %v413_v46 = vsub.f32 %v2661_v60, %v409_v13 }
  0x7f   : > { %1903 = vmatpush.bf16.msk.msrb.mxu1 %vm2761_vm13, %v2227_v16 }
  0x80   : > { %1834 = vmatmul.msk.bf16.vlgmr.msrb.gmra.mxu3 %vm556_vm12, %v2731_v21  ;;  %1893 = vmatpush.bf16.msk.msrb.mxu0 %vm2772_vm2, %v2227_v16  ;;  %v2877_v48 = vpack.c.bf16 %v413_v46, %v412_v45 }
  0x81   : > { %1923 = vmatpush.bf16.msk.msrb.mxu3 %vm2761_vm13, %v2227_v16 }
  0x82   : > { %1915 = vmatpush.bf16.msk.msrb.mxu2 %vm2793_vm5, %v2227_v16 }
  0x83   : > { %1905 = vmatpush.bf16.msk.msrb.mxu1 %vm2785_vm3, %v2227_v16 }
  0x84   : > { %1895 = vmatpush.bf16.msk.msrb.mxu0 %vm2793_vm5, %v2227_v16 }
  0x85   : > { %1925 = vmatpush.bf16.msk.msrb.mxu3 %vm2785_vm3, %v2227_v16 }
  0x86   : > { %1917 = vmatpush.bf16.msk.msrb.mxu2 %vm2835_vm15, %v2227_v16 }
  0x87   : > { %1907 = vmatpush.bf16.msk.msrb.mxu1 %vm2824_vm4, %v2227_v16 }
  0x88   : > { %1897 = vmatpush.bf16.msk.msrb.mxu0 %vm2835_vm15, %v2227_v16 }
  0x89   : > { %1927 = vmatpush.bf16.msk.msrb.mxu3 %vm2824_vm4, %v2227_v16 }
  0x8a   : > { %1919 = vmatpush.bf16.msk.msrb.mxu2 %vm2855_vm6, %v2227_v16 }
  0x8b   : > { %1909 = vmatpush.bf16.msk.msrb.mxu1 %vm2851_vm1, %v2227_v16 }
  0x8c   : > { %1899 = vmatpush.bf16.msk.msrb.mxu0 %vm2855_vm6, %v2227_v16 }
  0x8d   : > { %1805 = vmatmul.msk.bf16.gmra.mxu0 %vm556_vm12, %v2809_v36  ;;  %1825 = vmatmul.msk.bf16.gmra.mxu2 %vm556_vm12, %v2811_v37 }
  0x8e   : > { %1815 = vmatmul.msk.bf16.gmra.mxu1 %vm556_vm12, %v2809_v36  ;;  %1929 = vmatpush.bf16.msk.msrb.mxu3 %vm2851_vm1, %v2227_v16 }
  0x90   : > { %1835 = vmatmul.msk.bf16.gmra.mxu3 %vm556_vm12, %v2811_v37 }
  0x9d   : > { %1844 = vmatmul.msk.bf16.vlgmr.msra.gmra.mxu0 %vm556_vm12, %v2875_v47  ;;  %1864 = vmatmul.msk.bf16.vlgmr.msra.gmra.mxu2 %vm556_vm12, %v2877_v48 }
  0x9e   : > { %1854 = vmatmul.msk.bf16.vlgmr.msra.gmra.mxu1 %vm556_vm12, %v2875_v47  ;;  %1953 = vmatpush.bf16.msk.msra.mxu2 %vm2772_vm2, %v2227_v16 }
  0x9f   : > { %1943 = vmatpush.bf16.msk.msra.mxu1 %vm2761_vm13, %v2227_v16  ;;  %1933 = vmatpush.bf16.msk.msra.mxu0 %vm2772_vm2, %v2227_v16 }
  0xa0   : > { %1874 = vmatmul.msk.bf16.vlgmr.msra.gmra.mxu3 %vm556_vm12, %v2877_v48 }
  0xa1   : > { %1963 = vmatpush.bf16.msk.msra.mxu3 %vm2761_vm13, %v2227_v16 }
  0xa2   : > { %1955 = vmatpush.bf16.msk.msra.mxu2 %vm2793_vm5, %v2227_v16 }
  0xa3   : > { %1945 = vmatpush.bf16.msk.msra.mxu1 %vm2785_vm3, %v2227_v16  ;;  %1935 = vmatpush.bf16.msk.msra.mxu0 %vm2793_vm5, %v2227_v16 }
  0xa5   : > { %1965 = vmatpush.bf16.msk.msra.mxu3 %vm2785_vm3, %v2227_v16 }
  0xa6   : > { %1957 = vmatpush.bf16.msk.msra.mxu2 %vm2835_vm15, %v2227_v16 }
  0xa7   : > { %1947 = vmatpush.bf16.msk.msra.mxu1 %vm2824_vm4, %v2227_v16  ;;  %1937 = vmatpush.bf16.msk.msra.mxu0 %vm2835_vm15, %v2227_v16 }
  0xa9   : > { %1967 = vmatpush.bf16.msk.msra.mxu3 %vm2824_vm4, %v2227_v16 }
  0xaa   : > { %1959 = vmatpush.bf16.msk.msra.mxu2 %vm2855_vm6, %v2227_v16 }
  0xab   : > { %1949 = vmatpush.bf16.msk.msra.mxu1 %vm2851_vm1, %v2227_v16  ;;  %1939 = vmatpush.bf16.msk.msra.mxu0 %vm2855_vm6, %v2227_v16 }
  0xad   : > { %1969 = vmatpush.bf16.msk.msra.mxu3 %vm2851_vm1, %v2227_v16  ;;  %1845 = vmatmul.msk.bf16.gmra.mxu0 %vm556_vm12, %v2929_v57 }
  0xae   : > { %1865 = vmatmul.msk.bf16.gmra.mxu2 %vm556_vm12, %v2931_v58  ;;  %1855 = vmatmul.msk.bf16.gmra.mxu1 %vm556_vm12, %v2929_v57 }
  0xb0   : > { %1875 = vmatmul.msk.bf16.gmra.mxu3 %vm556_vm12, %v2931_v58 }
  0xbd   : > { %1900 = vmatmul.msk.bf16.vlgmr.msrb.gmra.mxu0 %vm556_vm12, %v2541_v39 }
  0xbe   : > { %1920 = vmatmul.msk.bf16.vlgmr.msrb.gmra.mxu2 %vm556_vm12, %v2543_v40  ;;  %1910 = vmatmul.msk.bf16.vlgmr.msrb.gmra.mxu1 %vm556_vm12, %v2541_v39 }
  0xbf   : > { %1993 = vmatpush.bf16.msk.msrb.mxu2 %vm2772_vm2, %v2227_v16  ;;  %1983 = vmatpush.bf16.msk.msrb.mxu1 %vm2761_vm13, %v2227_v16 }
  0xc0   : > { %1930 = vmatmul.msk.bf16.vlgmr.msrb.gmra.mxu3 %vm556_vm12, %v2543_v40  ;;  %1973 = vmatpush.bf16.msk.msrb.mxu0 %vm2772_vm2, %v2227_v16 }
  0xc1   : > { %2003 = vmatpush.bf16.msk.msrb.mxu3 %vm2761_vm13, %v2227_v16 }
  0xc3   : > { %1995 = vmatpush.bf16.msk.msrb.mxu2 %vm2793_vm5, %v2227_v16  ;;  %1985 = vmatpush.bf16.msk.msrb.mxu1 %vm2785_vm3, %v2227_v16 }
  0xc4   : > { %1975 = vmatpush.bf16.msk.msrb.mxu0 %vm2793_vm5, %v2227_v16  ;;  %vm1602_vm5 = vcmask 1040384  }
  0xc5   : > { %2005 = vmatpush.bf16.msk.msrb.mxu3 %vm2785_vm3, %v2227_v16  ;;  %vm1198_vm3 = vcmask 1043456  }
  0xc7   : > { %1997 = vmatpush.bf16.msk.msrb.mxu2 %vm2835_vm15, %v2227_v16  ;;  %1987 = vmatpush.bf16.msk.msrb.mxu1 %vm2824_vm4, %v2227_v16 }
  0xc8   : > { %1977 = vmatpush.bf16.msk.msrb.mxu0 %vm2835_vm15, %v2227_v16 }
  0xc9   : > { %2007 = vmatpush.bf16.msk.msrb.mxu3 %vm2824_vm4, %v2227_v16 }
  0xcb   : > { %1999 = vmatpush.bf16.msk.msrb.mxu2 %vm2855_vm6, %v2227_v16  ;;  %1989 = vmatpush.bf16.msk.msrb.mxu1 %vm2851_vm1, %v2227_v16 }
  0xcc   : > { %1979 = vmatpush.bf16.msk.msrb.mxu0 %vm2855_vm6, %v2227_v16 }
  0xcd   : > { %2009 = vmatpush.bf16.msk.msrb.mxu3 %vm2851_vm1, %v2227_v16  ;;  %1901 = vmatmul.msk.bf16.gmra.mxu0 %vm556_vm12, %v2631_v55  ;;  %v1170_v16 = vld [vmem:[%s308_s29] sm:$0x3] }
  0xce   : > { %1921 = vmatmul.msk.bf16.gmra.mxu2 %vm556_vm12, %v2633_v56  ;;  %1911 = vmatmul.msk.bf16.gmra.mxu1 %vm556_vm12, %v2631_v55  ;;  %v1172_v55 = vperm.slane %v1170_v16, 1  ;;  %v1171_v59 = vperm.slane %v1170_v16, 0 }
  0xd0   : > { %1931 = vmatmul.msk.bf16.gmra.mxu3 %vm556_vm12, %v2633_v56  ;;  %vm1174_vm13 = vcmp.eq.s32.totalorder %v2404_v1, %v1172_v55  ;;  %vm1173_vm2 = vcmp.eq.s32.totalorder %v2404_v1, %v1171_v59 }
  0xd1   : > { %v2013_v7 = vsel %vm1174_vm13, 1.0, %v2228_v4  ;;  %v2012_v8 = vsel %vm1173_vm2, 1.0, %v2228_v4 }
  0xd2   : > { %v1180_v10 = vpack.c.bf16 %v2013_v7, %v2013_v7  ;;  %v1179_v11 = vpack.c.bf16 %v2012_v8, %v2012_v8 }
  0xd4   : > { %v3029_v14 = vsel %vm1198_vm3, %v1180_v10, 0  ;;  %v3031_v15 = vsel %vm1198_vm3, %v1179_v11, 0 }
  0xda   : > { %v572_v39 = vpop.f32.mrf.mxu0 }
  0xdb   : > { %v591_v40 = vpop.f32.mrf.mxu1 }
  0xdd   : > { %1940 = vmatmul.msk.bf16.vlgmr.msra.gmra.mxu0 %vm556_vm12, %v2729_v20 }
  0xde   : > { %1960 = vmatmul.msk.bf16.vlgmr.msra.gmra.mxu2 %vm556_vm12, %v2731_v21  ;;  %1950 = vmatmul.msk.bf16.vlgmr.msra.gmra.mxu1 %vm556_vm12, %v2729_v20 }
  0xdf   : > { %1266 = vmatpush.bf16.msra.mxu2 %v3031_v15  ;;  %1231 = vmatpush.bf16.msra.mxu1 %v3029_v14 }
  0xe0   : > { %1970 = vmatmul.msk.bf16.vlgmr.msra.gmra.mxu3 %vm556_vm12, %v2731_v21  ;;  %v626_v60 = vpop.f32.mrf.mxu2  ;;  %1212 = vmatpush.bf16.msra.mxu0 %v3031_v15 }
  0xe1   : > { %v627_v56 = vadd.f32 %v626_v60, %v572_v39  ;;  %1285 = vmatpush.bf16.msra.mxu3 %v3029_v14 }
  0xe2   : > { %v574_v63 = vpop.f32.mrf.mxu0 }
  0xe3   : > { %v645_v61 = vpop.f32.mrf.mxu3  ;;  %v593_v9 = vpop.f32.mrf.mxu1 }
  0xe4   : > { %v646_v62 = vadd.f32 %v645_v61, %v591_v40  ;;  %v420_v40 = vld [vmem:[%s3402_s5 + $0x10] sm:$0xff] }
  0xe5   : > { %v424_v60 = vpack.c.bf16 %v420_v40, %v420_v40 }
  0xe7   : > { %v428_v8 = vunpack.c.l.bf16 %v424_v60 }
  0xe8   : > { %v628_v1 = vpop.f32.mrf.mxu2 }
  0xe9   : > { %v629_v17 = vadd.f32 %v628_v1, %v574_v63 }
  0xea   : > { %v577_v20 = vpop.f32.mrf.mxu0 }
  0xeb   : > { %v647_v18 = vpop.f32.mrf.mxu3  ;;  %v596_v21 = vpop.f32.mrf.mxu1 }
  0xec   : > { %v648_v19 = vadd.f32 %v647_v18, %v593_v9 }
  0xed   : > { %1941 = vmatmul.msk.bf16.gmra.mxu0 %vm556_vm12, %v2809_v36 }
  0xee   : > { %1961 = vmatmul.msk.bf16.gmra.mxu2 %vm556_vm12, %v2811_v37  ;;  %1951 = vmatmul.msk.bf16.gmra.mxu1 %vm556_vm12, %v2809_v36  ;;  %v418_v36 = vld [vmem:[%s3402_s5] sm:$0xff] }
  0xef   : > { %v422_v13 = vpack.c.bf16 %v418_v36, %v418_v36 }
  0xf0   : > { %1971 = vmatmul.msk.bf16.gmra.mxu3 %vm556_vm12, %v2811_v37  ;;  %v631_v23 = vpop.f32.mrf.mxu2  ;;  %v419_v37 = vld [vmem:[%s3402_s5 + $0x8] sm:$0xff] }
  0xf1   : > { %v632_v24 = vadd.f32 %v631_v23, %v577_v20  ;;  %v423_v42 = vpack.c.bf16 %v419_v37, %v419_v37  ;;  %v426_v44 = vunpack.c.l.bf16 %v422_v13  ;;  %v1247_v63 = vunpack.c.l.b16 %v422_v13 }
  0xf2   : > { %v579_v27 = vpop.f32.mrf.mxu0 }
  0xf3   : > { %v650_v25 = vpop.f32.mrf.mxu3  ;;  %v598_v28 = vpop.f32.mrf.mxu1  ;;  %v427_v45 = vunpack.c.l.bf16 %v423_v42  ;;  %v3079_v50 = vsub.f32 %v418_v36, %v426_v44  ;;  %v1248_v4 = vunpack.c.l.b16 %v423_v42 }
  0xf4   : > { %v651_v26 = vadd.f32 %v650_v25, %v596_v21  ;;  %v3115_v21 = vsub.f32 %v420_v40, %v428_v8 }
  0xf5   : > { %v3081_v51 = vsub.f32 %v419_v37, %v427_v45  ;;  %v3093_v54 = vpack.c.bf16 %v3079_v50, %v3079_v50  ;;  %v1251_v1 = vpack.c.b16 %v1248_v4, %v1247_v63 }
  0xf6   : > { %v3127_v25 = vpack.c.bf16 %v3115_v21, %v3115_v21 }
  0xf7   : > { %v3097_v39 = vpack.c.bf16 %v3081_v51, %v3081_v51  ;;  %v1185_v61 = vunpack.c.l.b16 %v3093_v54 }
  0xf8   : > { %v633_v29 = vpop.f32.mrf.mxu2 }
  0xf9   : > { %v634_v30 = vadd.f32 %v633_v29, %v579_v27 }
  0xfa   : > { %v670_v2 = vpop.f32.mrf.mxu0 }
  0xfb   : > { %v652_v31 = vpop.f32.mrf.mxu3  ;;  %v3045_v3 = vadd.f32 %v670_v2, %v627_v56  ;;  %v689_v5 = vpop.f32.mrf.mxu1 }
  0xfc   : > { %v653_v32 = vadd.f32 %v652_v31, %v598_v28  ;;  %v3047_v6 = vadd.f32 %v689_v5, %v646_v62  ;;  %v1186_v62 = vunpack.c.l.b16 %v3097_v39  ;;  %v448_v31 = vld [vmem:[%s3403_s6] sm:$0xff] }
  0xfd   : > { %1980 = vmatmul.msk.bf16.vlgmr.msrb.gmra.mxu0 %vm556_vm12, %v2875_v47  ;;  %v3147_v36 = vpack.c.bf16 %v448_v31, %v448_v31 }
  0xfe   : > { %2000 = vmatmul.msk.bf16.vlgmr.msrb.gmra.mxu2 %vm556_vm12, %v2877_v48  ;;  %1990 = vmatmul.msk.bf16.vlgmr.msrb.gmra.mxu1 %vm556_vm12, %v2875_v47  ;;  %v1189_v11 = vpack.c.b16 %v1186_v62, %v1185_v61  ;;  %v438_v61 = vunpack.c.l.bf16 %v3093_v54  ;;  %v450_v54 = vld [vmem:[%s3403_s6 + $0x10] sm:$0xff] }
  0xff   : > { %1372 = vmatpush.bf16.msrb.mxu2 %v3031_v15  ;;  %1329 = vmatpush.bf16.msrb.mxu1 %v3029_v14 }
 0x100   : > { %2010 = vmatmul.msk.bf16.vlgmr.msrb.gmra.mxu3 %vm556_vm12, %v2877_v48  ;;  %v732_v33 = vpop.f32.mrf.mxu2  ;;  %1310 = vmatpush.bf16.msrb.mxu0 %v3031_v15 }
 0x101   : > { %1391 = vmatpush.bf16.msrb.mxu3 %v3029_v14 }
 0x102   : > { %v672_v35 = vpop.f32.mrf.mxu0 }
 0x103   : > { %v751_v34 = vpop.f32.mrf.mxu3  ;;  %v3067_v38 = vadd.f32 %v672_v35, %v629_v17  ;;  %v691_v41 = vpop.f32.mrf.mxu1 }
 0x104   : > { %v3069_v12 = vadd.f32 %v691_v41, %v648_v19 }
 0x108   : > { %v734_v43 = vpop.f32.mrf.mxu2 }
 0x10a   : > { %v675_v46 = vpop.f32.mrf.mxu0 }
 0x10b   : > { %v753_v22 = vpop.f32.mrf.mxu3  ;;  %v3071_v47 = vadd.f32 %v675_v46, %v632_v24  ;;  %v694_v48 = vpop.f32.mrf.mxu1 }
 0x10c   : > { %v3073_v49 = vadd.f32 %v694_v48, %v651_v26 }
 0x10d   : > { %1981 = vmatmul.msk.bf16.gmra.mxu0 %vm556_vm12, %v2929_v57 }
 0x10e   : > { %2001 = vmatmul.msk.bf16.gmra.mxu2 %vm556_vm12, %v2931_v58  ;;  %1991 = vmatmul.msk.bf16.gmra.mxu1 %vm556_vm12, %v2929_v57  ;;  %v421_v57 = vld [vmem:[%s3402_s5 + $0x18] sm:$0xff] }
 0x10f   : > { %v425_v56 = vpack.c.bf16 %v421_v57, %v421_v57 }
 0x110   : > { %2011 = vmatmul.msk.bf16.gmra.mxu3 %vm556_vm12, %v2931_v58  ;;  %v3087_v52 = vpop.f32.mrf.mxu2  ;;  %vm1191_vm12 = vcmask 64512  }
 0x111   : > { %v429_v9 = vunpack.c.l.bf16 %v425_v56  ;;  %v1250_v35 = vunpack.c.l.b16 %v425_v56 }
 0x112   : > { %v677_v58 = vpop.f32.mrf.mxu0 }
 0x113   : > { %v3089_v53 = vpop.f32.mrf.mxu3  ;;  %v3105_v16 = vadd.f32 %v677_v58, %v634_v30  ;;  %v696_v55 = vpop.f32.mrf.mxu1  ;;  %v3117_v23 = vsub.f32 %v421_v57, %v429_v9 }
 0x114   : > { %v3107_v59 = vadd.f32 %v696_v55, %v653_v32  ;;  %v449_v32 = vld [vmem:[%s3403_s6 + $0x8] sm:$0xff] }
 0x115   : > { %3454 = vst [vmem:[#allocation14_spill] sm:$0xff] %v3105_v16  ;;  %v3131_v26 = vpack.c.bf16 %v3117_v23, %v3117_v23  ;;  %v3149_v37 = vpack.c.bf16 %v449_v32, %v449_v32 }
 0x116   : > { %3455 = vst [vmem:[#allocation15_spill] sm:$0xff] %v3107_v59 }
 0x118   : > { %v3111_v7 = vpop.f32.mrf.mxu2 }
 0x11a   : > { %v786_v17 = vpop.f32.mrf.mxu0 }
 0x11b   : > { %v3113_v10 = vpop.f32.mrf.mxu3  ;;  %v787_v18 = vadd.f32 %v786_v17, %v732_v33  ;;  %v805_v19 = vpop.f32.mrf.mxu1 }
 0x11c   : > { %v806_v20 = vadd.f32 %v805_v19, %v751_v34  ;;  %v1249_v34 = vunpack.c.l.b16 %v424_v60 }
 0x11d   : > { %2014 = vmatmul.msk.bf16.vlgmr.msra.gmra.mxu0 %vm1191_vm12, %v1189_v11 }
 0x11e   : > { %2018 = vmatmul.msk.bf16.vlgmr.msra.gmra.mxu2 %vm1191_vm12, %v1251_v1  ;;  %2016 = vmatmul.msk.bf16.vlgmr.msra.gmra.mxu1 %vm1191_vm12, %v1189_v11  ;;  %v1252_v45 = vpack.c.b16 %v1250_v35, %v1249_v34 }
 0x11f   : > { %1470 = vmatpush.bf16.msra.mxu2 %v3031_v15  ;;  %1445 = vmatpush.bf16.msra.mxu1 %v3029_v14 }
 0x120   : > { %2020 = vmatmul.msk.bf16.vlgmr.msra.gmra.mxu3 %vm1191_vm12, %v1251_v1  ;;  %v830_v24 = vpop.f32.mrf.mxu2  ;;  %1426 = vmatpush.bf16.msra.mxu0 %v3031_v15  ;;  %v1188_v15 = vunpack.c.l.b16 %v3131_v26 }
 0x121   : > { %1489 = vmatpush.bf16.msra.mxu3 %v3029_v14  ;;  %v3135_v27 = vadd.f32 %v830_v24, %v787_v18  ;;  %v1187_v14 = vunpack.c.l.b16 %v3127_v25  ;;  %v442_v18 = vsub.f32 %v3079_v50, %v438_v61 }
 0x122   : > { %v788_v30 = vpop.f32.mrf.mxu0 }
 0x123   : > { %v849_v28 = vpop.f32.mrf.mxu3  ;;  %v789_v2 = vadd.f32 %v788_v30, %v734_v43  ;;  %v807_v5 = vpop.f32.mrf.mxu1  ;;  %v1190_v13 = vpack.c.b16 %v1188_v15, %v1187_v14  ;;  %v456_v43 = vunpack.c.l.bf16 %v3147_v36 }
 0x124   : > { %v3137_v29 = vadd.f32 %v849_v28, %v806_v20  ;;  %v808_v33 = vadd.f32 %v807_v5, %v753_v22  ;;  %v457_v22 = vunpack.c.l.bf16 %v3149_v37  ;;  %v3193_v28 = vpack.c.bf16 %v450_v54, %v450_v54 }
 0x125   : > { %v3161_v55 = vsub.f32 %v448_v31, %v456_v43 }
 0x126   : > { %v3163_v60 = vsub.f32 %v449_v32, %v457_v22 }
 0x127   : > { %v3173_v63 = vpack.c.bf16 %v3161_v55, %v3161_v55 }
 0x128   : > { %v832_v41 = vpop.f32.mrf.mxu2  ;;  %v3177_v4 = vpack.c.bf16 %v3163_v60, %v3163_v60 }
 0x129   : > { %v3151_v42 = vadd.f32 %v832_v41, %v789_v2  ;;  %v1353_v20 = vunpack.c.l.b16 %v3173_v63  ;;  %v440_v41 = vunpack.c.l.bf16 %v3127_v25 }
 0x12a   : > { %v791_v48 = vpop.f32.mrf.mxu0  ;;  %v1354_v24 = vunpack.c.l.b16 %v3177_v4 }
 0x12b   : > { %v851_v44 = vpop.f32.mrf.mxu3  ;;  %v792_v40 = vadd.f32 %v791_v48, %v3087_v52  ;;  %v810_v57 = vpop.f32.mrf.mxu1  ;;  %v439_v52 = vunpack.c.l.bf16 %v3097_v39  ;;  %v451_v39 = vld [vmem:[%s3403_s6 + $0x18] sm:$0xff] }
 0x12c   : > { %v3155_v46 = vadd.f32 %v851_v44, %v808_v33  ;;  %v811_v58 = vadd.f32 %v810_v57, %v3089_v53  ;;  %v3195_v30 = vpack.c.bf16 %v451_v39, %v451_v39  ;;  %v1357_v5 = vpack.c.b16 %v1354_v24, %v1353_v20 }
 0x12d   : > { %2015 = vmatmul.msk.bf16.gmra.mxu0 %vm1191_vm12, %v1190_v13  ;;  %v443_v19 = vsub.f32 %v3081_v51, %v439_v52 }
 0x12e   : > { %2019 = vmatmul.msk.bf16.gmra.mxu2 %vm1191_vm12, %v1252_v45  ;;  %2017 = vmatmul.msk.bf16.gmra.mxu1 %vm1191_vm12, %v1190_v13  ;;  %v459_v50 = vunpack.c.l.bf16 %v3195_v30 }
 0x12f   : > { %v446_v32 = vpack.c.bf16 %v443_v19, %v442_v18  ;;  %v468_v18 = vunpack.c.l.bf16 %v3173_v63  ;;  %v469_v19 = vunpack.c.l.bf16 %v3177_v4 }
 0x130   : > { %2021 = vmatmul.msk.bf16.gmra.mxu3 %vm1191_vm12, %v1252_v45  ;;  %v3207_v34 = vsub.f32 %v451_v39, %v459_v50  ;;  %v441_v45 = vunpack.c.l.bf16 %v3131_v26 }
 0x131   : > { %v835_v56 = vpop.f32.mrf.mxu2 }
 0x132   : > { %v3169_v62 = vadd.f32 %v835_v56, %v792_v40  ;;  %v793_v9 = vpop.f32.mrf.mxu0  ;;  %v467_v22 = vpack.c.bf16 %v3207_v34, %v3207_v34  ;;  %v445_v56 = vsub.f32 %v3117_v23, %v441_v45 }
 0x133   : > { %v854_v53 = vpop.f32.mrf.mxu3  ;;  %v794_v11 = vadd.f32 %v793_v9, %v3111_v7  ;;  %v812_v1 = vpop.f32.mrf.mxu1 }
 0x134   : > { %v3179_v8 = vadd.f32 %v854_v53, %v811_v58  ;;  %v813_v17 = vadd.f32 %v812_v1, %v3113_v10  ;;  %v458_v10 = vunpack.c.l.bf16 %v3193_v28  ;;  %v444_v58 = vsub.f32 %v3115_v21, %v440_v41 }
 0x135   : > { %v1356_v52 = vunpack.c.l.b16 %v467_v22 }
 0x136   : > { %v3205_v15 = vsub.f32 %v450_v54, %v458_v10  ;;  %v447_v54 = vpack.c.bf16 %v445_v56, %v444_v58  ;;  %v473_v10 = vsub.f32 %v3163_v60, %v469_v19  ;;  %v471_v60 = vunpack.c.l.bf16 %v467_v22 }
 0x138   : > { %v466_v43 = vpack.c.bf16 %v3205_v15, %v3205_v15 }
 0x139   : > { %v837_v31 = vpop.f32.mrf.mxu2 }
 0x13a   : > { %v3197_v2 = vadd.f32 %v837_v31, %v794_v11  ;;  %v935_v51 = vpop.f32.mrf.mxu0  ;;  %v1355_v61 = vunpack.c.l.b16 %v466_v43 }
 0x13b   : > { %v856_v7 = vpop.f32.mrf.mxu3  ;;  %v954_v14 = vpop.f32.mrf.mxu1 }
 0x13c   : > { %3456 = vst [vmem:[#allocation16_spill] sm:$0xff] %v3197_v2  ;;  %v3201_v33 = vadd.f32 %v856_v7, %v813_v17  ;;  %v1358_v26 = vpack.c.b16 %v1356_v52, %v1355_v61  ;;  %v1408_v7 = vunpack.c.l.b16 %v3149_v37  ;;  %v1410_v61 = vunpack.c.l.b16 %v3195_v30 }
 0x13d   : > { %2022 = vmatmul.msk.bf16.vlgmr.msrb.gmra.mxu0 %vm1191_vm12, %v446_v32 }
 0x13e   : > { %3457 = vst [vmem:[#allocation17_spill] sm:$0xff] %v3201_v33  ;;  %2026 = vmatmul.msk.bf16.vlgmr.msrb.gmra.mxu2 %vm1191_vm12, %v1357_v5  ;;  %2024 = vmatmul.msk.bf16.vlgmr.msrb.gmra.mxu1 %vm1191_vm12, %v446_v32  ;;  %v1407_v32 = vunpack.c.l.b16 %v3147_v36 }
 0x140   : > { %2028 = vmatmul.msk.bf16.vlgmr.msrb.gmra.mxu3 %vm1191_vm12, %v1357_v5  ;;  %v472_v5 = vsub.f32 %v3161_v55, %v468_v18  ;;  %v470_v55 = vunpack.c.l.bf16 %v466_v43 }
 0x141   : > { %v973_v35 = vpop.f32.mrf.mxu2 }
 0x142   : > { %v974_v13 = vadd.f32 %v973_v35, %v935_v51  ;;  %v937_v40 = vpop.f32.mrf.mxu0  ;;  %v1411_v35 = vpack.c.b16 %v1408_v7, %v1407_v32  ;;  %v476_v41 = vpack.c.bf16 %v473_v10, %v472_v5  ;;  %v474_v52 = vsub.f32 %v3205_v15, %v470_v55 }
 0x143   : > { %v992_v44 = vpop.f32.mrf.mxu3  ;;  %v956_v57 = vpop.f32.mrf.mxu1 }
 0x144   : > { %v993_v48 = vadd.f32 %v992_v44, %v954_v14 }
 0x149   : > { %v975_v25 = vpop.f32.mrf.mxu2 }
 0x14a   : > { %v976_v53 = vadd.f32 %v975_v25, %v937_v40  ;;  %v940_v11 = vpop.f32.mrf.mxu0  ;;  %v475_v25 = vsub.f32 %v3207_v34, %v471_v60 }
 0x14b   : > { %v994_v9 = vpop.f32.mrf.mxu3  ;;  %v959_v1 = vpop.f32.mrf.mxu1 }
 0x14c   : > { %v995_v39 = vadd.f32 %v994_v9, %v956_v57 }
 0x14d   : > { %2023 = vmatmul.msk.bf16.gmra.mxu0 %vm1191_vm12, %v447_v54 }
 0x14e   : > { %2027 = vmatmul.msk.bf16.gmra.mxu2 %vm1191_vm12, %v1358_v26  ;;  %2025 = vmatmul.msk.bf16.gmra.mxu1 %vm1191_vm12, %v447_v54 }
 0x150   : > { %2029 = vmatmul.msk.bf16.gmra.mxu3 %vm1191_vm12, %v1358_v26 }
 0x151   : > { %v978_v21 = vpop.f32.mrf.mxu2 }
 0x152   : > { %v979_v23 = vadd.f32 %v978_v21, %v940_v11  ;;  %v942_v24 = vpop.f32.mrf.mxu0  ;;  %v477_v11 = vpack.c.bf16 %v475_v25, %v474_v52 }
 0x153   : > { %v997_v17 = vpop.f32.mrf.mxu3  ;;  %v961_v31 = vpop.f32.mrf.mxu1 }
 0x154   : > { %v998_v20 = vadd.f32 %v997_v17, %v959_v1 }
 0x159   : > { %v980_v50 = vpop.f32.mrf.mxu2 }
 0x15a   : > { %v981_v51 = vadd.f32 %v980_v50, %v942_v24  ;;  %v1011_v63 = vpop.f32.mrf.mxu0 }
 0x15b   : > { %v999_v14 = vpop.f32.mrf.mxu3  ;;  %v3229_v45 = vadd.f32 %v1011_v63, %v974_v13  ;;  %v1030_v4 = vpop.f32.mrf.mxu1 }
 0x15c   : > { %v1000_v44 = vadd.f32 %v999_v14, %v961_v31  ;;  %v3231_v40 = vadd.f32 %v1030_v4, %v993_v48  ;;  %v1409_v48 = vunpack.c.l.b16 %v3193_v28 }
 0x15d   : > { %2030 = vmatmul.msk.bf16.vlgmr.msra.gmra.mxu0 %vm1191_vm12, %v1411_v35 }
 0x15e   : > { %2034 = vmatmul.msk.bf16.vlgmr.msra.gmra.mxu2 %vm1191_vm12, %v476_v41  ;;  %2032 = vmatmul.msk.bf16.vlgmr.msra.gmra.mxu1 %vm1191_vm12, %v1411_v35  ;;  %v1412_v26 = vpack.c.b16 %v1410_v61, %v1409_v48 }
 0x160   : > { %2036 = vmatmul.msk.bf16.vlgmr.msra.gmra.mxu3 %vm1191_vm12, %v476_v41 }
 0x161   : > { %v1057_v36 = vpop.f32.mrf.mxu2 }
 0x162   : > { %v1013_v57 = vpop.f32.mrf.mxu0 }
 0x163   : > { %v1076_v37 = vpop.f32.mrf.mxu3  ;;  %v3237_v58 = vadd.f32 %v1013_v57, %v976_v53  ;;  %v1032_v13 = vpop.f32.mrf.mxu1 }
 0x164   : > { %v3239_v56 = vadd.f32 %v1032_v13, %v995_v39 }
 0x169   : > { %v1059_v9 = vpop.f32.mrf.mxu2 }
 0x16a   : > { %v1016_v43 = vpop.f32.mrf.mxu0 }
 0x16b   : > { %v1078_v54 = vpop.f32.mrf.mxu3  ;;  %v3245_v22 = vadd.f32 %v1016_v43, %v979_v23  ;;  %v1035_v53 = vpop.f32.mrf.mxu1 }
 0x16c   : > { %v3247_v1 = vadd.f32 %v1035_v53, %v998_v20 }
 0x16d   : > { %2031 = vmatmul.msk.bf16.gmra.mxu0 %vm1191_vm12, %v1412_v26 }
 0x16e   : > { %2035 = vmatmul.msk.bf16.gmra.mxu2 %vm1191_vm12, %v477_v11  ;;  %2033 = vmatmul.msk.bf16.gmra.mxu1 %vm1191_vm12, %v1412_v26 }
 0x170   : > { %2037 = vmatmul.msk.bf16.gmra.mxu3 %vm1191_vm12, %v477_v11 }
 0x171   : > { %v1062_v28 = vpop.f32.mrf.mxu2 }
 0x172   : > { %v1018_v15 = vpop.f32.mrf.mxu0 }
 0x173   : > { %v1081_v30 = vpop.f32.mrf.mxu3  ;;  %v3253_v34 = vadd.f32 %v1018_v15, %v981_v51  ;;  %v1037_v39 = vpop.f32.mrf.mxu1 }
 0x174   : > { %v3255_v21 = vadd.f32 %v1037_v39, %v1000_v44 }
 0x176   : > { %3458 = vst [vmem:[#allocation18_spill] sm:$0xff] %v3255_v21 }
 0x179   : > { %v1064_v23 = vpop.f32.mrf.mxu2 }
 0x17a   : > { %v1095_v18 = vpop.f32.mrf.mxu0 }
 0x17b   : > { %v1083_v17 = vpop.f32.mrf.mxu3  ;;  %v1096_v19 = vadd.f32 %v1095_v18, %v1057_v36  ;;  %v1114_v20 = vpop.f32.mrf.mxu1 }
 0x17c   : > { %v1115_v24 = vadd.f32 %v1114_v20, %v1076_v37 }
 0x181   : > { %v1133_v31 = vpop.f32.mrf.mxu2 }
 0x182   : > { %v3257_v32 = vadd.f32 %v1133_v31, %v1096_v19  ;;  %v1097_v10 = vpop.f32.mrf.mxu0 }
 0x183   : > { %v1152_v7 = vpop.f32.mrf.mxu3  ;;  %v1098_v50 = vadd.f32 %v1097_v10, %v1059_v9  ;;  %v1116_v14 = vpop.f32.mrf.mxu1 }
 0x184   : > { %v3259_v5 = vadd.f32 %v1152_v7, %v1115_v24  ;;  %v1117_v51 = vadd.f32 %v1116_v14, %v1078_v54 }
 0x189   : > { %v1135_v35 = vpop.f32.mrf.mxu2 }
 0x18a   : > { %v3261_v41 = vadd.f32 %v1135_v35, %v1098_v50  ;;  %v1100_v4 = vpop.f32.mrf.mxu0 }
 0x18b   : > { %v1154_v44 = vpop.f32.mrf.mxu3  ;;  %v1101_v36 = vadd.f32 %v1100_v4, %v1062_v28  ;;  %v1119_v55 = vpop.f32.mrf.mxu1 }
 0x18c   : > { %v3263_v63 = vadd.f32 %v1154_v44, %v1117_v51  ;;  %v1120_v37 = vadd.f32 %v1119_v55, %v1081_v30 }
 0x191   : > { %v1138_v60 = vpop.f32.mrf.mxu2 }
 0x192   : > { %v3265_v57 = vadd.f32 %v1138_v60, %v1101_v36  ;;  %v1102_v61 = vpop.f32.mrf.mxu0 }
 0x193   : > { %v1157_v13 = vpop.f32.mrf.mxu3  ;;  %v1103_v52 = vadd.f32 %v1102_v61, %v1064_v23  ;;  %v1121_v25 = vpop.f32.mrf.mxu1 }
 0x194   : > { %v3267_v48 = vadd.f32 %v1157_v13, %v1120_v37  ;;  %v1122_v9 = vadd.f32 %v1121_v25, %v1083_v17 }
 0x199   : > { %v1140_v54 = vpop.f32.mrf.mxu2 }
 0x19a   : > { %v3269_v26 = vadd.f32 %v1140_v54, %v1103_v52  ;;  %v1214_v53 = vpop.f32.mrf.mxu0 }
 0x19b   : > { %v1159_v11 = vpop.f32.mrf.mxu3  ;;  %v1233_v28 = vpop.f32.mrf.mxu1 }
 0x19c   : > { %v3271_v43 = vadd.f32 %v1159_v11, %v1122_v9 }
 0x19e   : > { %3459 = vst [vmem:[#allocation19_spill] sm:$0xff] %v3271_v43 }
 0x1a1   : > { %v1268_v15 = vpop.f32.mrf.mxu2 }
 0x1a2   : > { %v1269_v30 = vadd.f32 %v1268_v15, %v1214_v53  ;;  %v1216_v19 = vpop.f32.mrf.mxu0 }
 0x1a3   : > { %v1287_v39 = vpop.f32.mrf.mxu3  ;;  %v1235_v20 = vpop.f32.mrf.mxu1 }
 0x1a4   : > { %v1288_v18 = vadd.f32 %v1287_v39, %v1233_v28 }
 0x1a9   : > { %v1270_v24 = vpop.f32.mrf.mxu2 }
 0x1aa   : > { %v1271_v31 = vadd.f32 %v1270_v24, %v1216_v19  ;;  %v1219_v10 = vpop.f32.mrf.mxu0 }
 0x1ab   : > { %v1289_v7 = vpop.f32.mrf.mxu3  ;;  %v1238_v17 = vpop.f32.mrf.mxu1 }
 0x1ac   : > { %v1290_v23 = vadd.f32 %v1289_v7, %v1235_v20 }
 0x1b1   : > { %v1273_v50 = vpop.f32.mrf.mxu2 }
 0x1b2   : > { %v1274_v14 = vadd.f32 %v1273_v50, %v1219_v10  ;;  %v1221_v44 = vpop.f32.mrf.mxu0 }
 0x1b3   : > { %v1292_v51 = vpop.f32.mrf.mxu3  ;;  %v1240_v4 = vpop.f32.mrf.mxu1 }
 0x1b4   : > { %v1293_v35 = vadd.f32 %v1292_v51, %v1238_v17 }
 0x1b9   : > { %v1275_v36 = vpop.f32.mrf.mxu2 }
 0x1ba   : > { %v1312_v37 = vpop.f32.mrf.mxu0 }
 0x1bb   : > { %v1294_v55 = vpop.f32.mrf.mxu3  ;;  %v1341_v60 = vadd.f32 %v1312_v37, %v1269_v30  ;;  %v1331_v13 = vpop.f32.mrf.mxu1 }
 0x1bc   : > { %v1342_v61 = vadd.f32 %v1331_v13, %v1288_v18 }
 0x1bd   : > { %v1509_v52 = vmul.f32 %v1341_v60, %v3229_v45  ;;  %v1549_v25 = vmul.f32 %v1341_v60, %v3257_v32 }
 0x1be   : > { %v1510_v9 = vmul.f32 %v1342_v61, %v3231_v40  ;;  %v1550_v54 = vmul.f32 %v1342_v61, %v3259_v5 }
 0x1c1   : > { %v1374_v11 = vpop.f32.mrf.mxu2 }
 0x1c2   : > { %v1314_v28 = vpop.f32.mrf.mxu0 }
 0x1c3   : > { %v1393_v53 = vpop.f32.mrf.mxu3  ;;  %v1343_v15 = vadd.f32 %v1314_v28, %v1271_v31  ;;  %v1333_v39 = vpop.f32.mrf.mxu1  ;;  %v1276_v28 = vadd.f32 %v1275_v36, %v1221_v44 }
 0x1c4   : > { %v1344_v19 = vadd.f32 %v1333_v39, %v1290_v23  ;;  %v1295_v39 = vadd.f32 %v1294_v55, %v1240_v4 }
 0x1c5   : > { %v3278_v20 = vmul.f32 %v1343_v15, %v3237_v58  ;;  %v3281_v30 = vmul.f32 %v1343_v15, %v3261_v41 }
 0x1c6   : > { %v3284_v18 = vmul.f32 %v1344_v19, %v3239_v56  ;;  %v3287_v24 = vmul.f32 %v1344_v19, %v3263_v63 }
 0x1c9   : > { %v1376_v7 = vpop.f32.mrf.mxu2 }
 0x1ca   : > { %v1317_v17 = vpop.f32.mrf.mxu0 }
 0x1cb   : > { %v1395_v10 = vpop.f32.mrf.mxu3  ;;  %v1345_v50 = vadd.f32 %v1317_v17, %v1274_v14  ;;  %v1336_v51 = vpop.f32.mrf.mxu1 }
 0x1cc   : > { %v1346_v31 = vadd.f32 %v1336_v51, %v1293_v35 }
 0x1cd   : > { %v3290_v23 = vmul.f32 %v1345_v50, %v3245_v22  ;;  %v3293_v37 = vmul.f32 %v1345_v50, %v3265_v57 }
 0x1ce   : > { %v3296_v60 = vmul.f32 %v1346_v31, %v3247_v1  ;;  %v3299_v13 = vmul.f32 %v1346_v31, %v3267_v48 }
 0x1d1   : > { %v1379_v61 = vpop.f32.mrf.mxu2 }
 0x1d2   : > { %v1319_v19 = vpop.f32.mrf.mxu0 }
 0x1d3   : > { %v1398_v15 = vpop.f32.mrf.mxu3  ;;  %v1347_v14 = vadd.f32 %v1319_v19, %v1276_v28  ;;  %v1338_v17 = vpop.f32.mrf.mxu1 }
 0x1d4   : > { %v1348_v35 = vadd.f32 %v1338_v17, %v1295_v39 }
 0x1d5   : > { %v3302_v51 = vmul.f32 %v1347_v14, %v3253_v34  ;;  %v3305_v50 = vmul.f32 %v1347_v14, %v3269_v26 }
 0x1d6   : > { %v3308_v0 = vmul.f32 %v1348_v35, %v3255_v21  ;;  %v3311_v31 = vmul.f32 %v1348_v35, %v3271_v43 }
 0x1d7   : > { %3460 = vst [vmem:[#allocation20_spill] sm:$0xff] %v3302_v51 }
 0x1d8   : > { %3461 = vst [vmem:[#allocation21_spill] sm:$0xff] %v3305_v50 }
 0x1d9   : > { %3462 = vst [vmem:[#allocation22_spill] sm:$0xff] %v3308_v0  ;;  %v3313_v33 = vpop.f32.mrf.mxu2 }
 0x1da   : > { %3463 = vst [vmem:[#allocation23_spill] sm:$0xff] %v3311_v31  ;;  %v1428_v4 = vpop.f32.mrf.mxu0 }
 0x1db   : > { %v3315_v44 = vpop.f32.mrf.mxu3  ;;  %v1447_v36 = vpop.f32.mrf.mxu1  ;;  %v1429_v55 = vadd.f32 %v1428_v4, %v1374_v11 }
 0x1dc   : > { %v1448_v28 = vadd.f32 %v1447_v36, %v1393_v53 }
 0x1e1   : > { %v1472_v39 = vpop.f32.mrf.mxu2 }
 0x1e2   : > { %v1501_v19 = vadd.f32 %v1472_v39, %v1429_v55  ;;  %v1430_v14 = vpop.f32.mrf.mxu0 }
 0x1e3   : > { %v1491_v17 = vpop.f32.mrf.mxu3  ;;  %v1449_v0 = vpop.f32.mrf.mxu1  ;;  %v1431_v4 = vadd.f32 %v1430_v14, %v1376_v7 }
 0x1e4   : > { %v1502_v59 = vadd.f32 %v1491_v17, %v1448_v28  ;;  %v1517_v2 = vmul.f32 %v1501_v19, %v3257_v32  ;;  %v1541_v16 = vmul.f32 %v1501_v19, %v3229_v45  ;;  %v1450_v55 = vadd.f32 %v1449_v0, %v1395_v10 }
 0x1e6   : > { %v1518_v35 = vmul.f32 %v1502_v59, %v3259_v5  ;;  %v1542_v31 = vmul.f32 %v1502_v59, %v3231_v40  ;;  %v1525_v50 = vsub.f32 %v1509_v52, %v1517_v2  ;;  %v1557_v51 = vadd.f32 %v1549_v25, %v1541_v16 }
 0x1e8   : > { %v1526_v21 = vsub.f32 %v1510_v9, %v1518_v35  ;;  %v1558_v43 = vadd.f32 %v1550_v54, %v1542_v31  ;;  %v1533_v11 = vmul.f32 %v1525_v50, %v3045_v3  ;;  %v1565_v53 = vmul.f32 %v1557_v51, %v3135_v27 }
 0x1e9   : > { %v1474_v45 = vpop.f32.mrf.mxu2 }
 0x1ea   : > { %v1534_v36 = vmul.f32 %v1526_v21, %v3047_v6  ;;  %v1566_v32 = vmul.f32 %v1558_v43, %v3137_v29  ;;  %v1573_v28 = vsub.f32 %v1533_v11, %v1565_v53  ;;  %v1503_v39 = vadd.f32 %v1474_v45, %v1431_v4  ;;  %v1433_v2 = vpop.f32.mrf.mxu0  ;;  %v3466_v45 = vld [vmem:[#allocation20_spill] sm:$0xff] }
 0x1eb   : > { %v1493_v5 = vpop.f32.mrf.mxu3  ;;  %v1452_v3 = vpop.f32.mrf.mxu1 }
 0x1ec   : > { %v1574_v19 = vsub.f32 %v1534_v36, %v1566_v32  ;;  %v1504_v59 = vadd.f32 %v1493_v5, %v1450_v55  ;;  %v1519_v16 = vmul.f32 %v1503_v39, %v3261_v41  ;;  %v1543_v40 = vmul.f32 %v1503_v39, %v3237_v58  ;;  %v3464_v32 = vld [vmem:[#allocation19_spill] sm:$0xff]  ;;  %v3465_v55 = vld [vmem:[#allocation18_spill] sm:$0xff] }
 0x1ed   : > { %v1434_v41 = vadd.f32 %v1433_v2, %v1379_v61  ;;  %v3468_v39 = vld [vmem:[#allocation22_spill] sm:$0xff] }
 0x1ee   : > { %v1520_v27 = vmul.f32 %v1504_v59, %v3263_v63  ;;  %v1544_v52 = vmul.f32 %v1504_v59, %v3239_v56  ;;  %v1527_v6 = vsub.f32 %v3278_v20, %v1519_v16  ;;  %v1559_v0 = vadd.f32 %v3281_v30, %v1543_v40  ;;  %v3470_v2 = vld [vmem:[#allocation14_spill] sm:$0xff]  ;;  %v3471_v40 = vld [vmem:[#allocation16_spill] sm:$0xff] }
 0x1ef   : > { %v1453_v63 = vadd.f32 %v1452_v3, %v1398_v15  ;;  %v3472_v3 = vld [vmem:[#allocation15_spill] sm:$0xff] }
 0x1f0   : > { %v1528_v29 = vsub.f32 %v3284_v18, %v1520_v27  ;;  %v1560_v21 = vadd.f32 %v3287_v24, %v1544_v52  ;;  %v1535_v43 = vmul.f32 %v1527_v6, %v3067_v38  ;;  %v1567_v25 = vmul.f32 %v1559_v0, %v3151_v42  ;;  %v3473_v27 = vld [vmem:[#allocation17_spill] sm:$0xff] }
 0x1f1   : > { %v1477_v54 = vpop.f32.mrf.mxu2 }
 0x1f2   : > { %v1536_v58 = vmul.f32 %v1528_v29, %v3069_v12  ;;  %v1568_v9 = vmul.f32 %v1560_v21, %v3155_v46  ;;  %v1575_v56 = vsub.f32 %v1535_v43, %v1567_v25  ;;  %v1505_v7 = vadd.f32 %v1477_v54, %v1434_v41  ;;  %v1435_v12 = vpop.f32.mrf.mxu0 }
 0x1f3   : > { %v1496_v20 = vpop.f32.mrf.mxu3  ;;  %v1454_v50 = vpop.f32.mrf.mxu1 }
 0x1f4   : > { %v1576_v10 = vsub.f32 %v1536_v58, %v1568_v9  ;;  %v1506_v30 = vadd.f32 %v1496_v20, %v1453_v63  ;;  %v1581_v51 = vadd.f32 %v1575_v56, %v1573_v28  ;;  %v1521_v18 = vmul.f32 %v1505_v7, %v3265_v57  ;;  %v3467_v28 = vld [vmem:[#allocation21_spill] sm:$0xff] }
 0x1f5   : > { %v1545_v24 = vmul.f32 %v1505_v7, %v3245_v22  ;;  %v1436_v22 = vadd.f32 %v1435_v12, %v3313_v33  ;;  %v1455_v35 = vadd.f32 %v1454_v50, %v3315_v44 }
 0x1f6   : > { %v1590_v38 = vadd.f32 %v1576_v10, %v1574_v19  ;;  %v1522_v42 = vmul.f32 %v1506_v30, %v3267_v48  ;;  %v1546_v61 = vmul.f32 %v1506_v30, %v3247_v1  ;;  %v1529_v46 = vsub.f32 %v3290_v23, %v1521_v18  ;;  %v3469_v19 = vld [vmem:[#allocation23_spill] sm:$0xff] }
 0x1f7   : > { %v1561_v15 = vadd.f32 %v3293_v37, %v1545_v24  ;;  %v3474_v18 = vlaneseq }
 0x1f8   : > { %v1530_v31 = vsub.f32 %v3296_v60, %v1522_v42  ;;  %v1562_v17 = vadd.f32 %v3299_v13, %v1546_v61  ;;  %v1537_v14 = vmul.f32 %v1529_v46, %v3071_v47 }
 0x1f9   : > { %v1569_v57 = vmul.f32 %v1561_v15, %v3169_v62  ;;  %v1479_v23 = vpop.f32.mrf.mxu2  ;;  %vm1607_vm7 = vcmp.lt.s32.totalorder %v3474_v18, 256 }
 0x1fa   : > { %v1538_v48 = vmul.f32 %v1530_v31, %v3073_v49  ;;  %v1570_v1 = vmul.f32 %v1562_v17, %v3179_v8  ;;  %v1507_v37 = vadd.f32 %v1479_v23, %v1436_v22 }
 0x1fb   : > { %v1577_v11 = vsub.f32 %v1537_v14, %v1569_v57  ;;  %v1498_v53 = vpop.f32.mrf.mxu3 }
 0x1fc   : > { %v1578_v4 = vsub.f32 %v1538_v48, %v1570_v1  ;;  %v1508_v60 = vadd.f32 %v1498_v53, %v1455_v35  ;;  %v1523_v13 = vmul.f32 %v1507_v37, %v3269_v26  ;;  %v1547_v47 = vmul.f32 %v1507_v37, %v3253_v34 }
 0x1fd   : > { %v1582_v36 = vadd.f32 %v1581_v51, %v1577_v11 }
 0x1fe   : > { %v1591_v62 = vadd.f32 %v1590_v38, %v1578_v4  ;;  %v1524_v33 = vmul.f32 %v1508_v60, %v3464_v32  ;;  %v1548_v49 = vmul.f32 %v1508_v60, %v3465_v55  ;;  %v1531_v8 = vsub.f32 %v3466_v45, %v1523_v13 }
 0x1ff   : > { %v1563_v44 = vadd.f32 %v3467_v28, %v1547_v47 }
 0x200   : > { %v1532_v5 = vsub.f32 %v3468_v39, %v1524_v33  ;;  %v1564_v59 = vadd.f32 %v3469_v19, %v1548_v49  ;;  %v1539_v16 = vmul.f32 %v1531_v8, %v3470_v2 }
 0x201   : > { %v1571_v26 = vmul.f32 %v1563_v44, %v3471_v40 }
 0x202   : > { %v1540_v34 = vmul.f32 %v1532_v5, %v3472_v3  ;;  %v1572_v52 = vmul.f32 %v1564_v59, %v3473_v27 }
 0x203   : > { %v1579_v6 = vsub.f32 %v1539_v16, %v1571_v26 }
 0x204   : > { %v1580_v0 = vsub.f32 %v1540_v34, %v1572_v52 }
 0x205   : > { %v1583_v29 = vadd.f32 %v1582_v36, %v1579_v6 }
 0x206   : > { %v1592_v21 = vadd.f32 %v1591_v62, %v1580_v0 }
 0x207   : > { %v1584_v43 = vrot.slane %v1583_v29, 4 }
 0x208   : > { %v1593_v25 = vrot.slane %v1592_v21, 4 }
 0x209   : > { %v1585_v41 = vadd.f32 %v1584_v43, %v1583_v29 }
 0x20a   : > { %v1594_v58 = vadd.f32 %v1593_v25, %v1592_v21 }
 0x20b   : > { %v1586_v9 = vrot.slane %v1585_v41, 2 }
 0x20c   : > { %v1595_v63 = vrot.slane %v1594_v58, 2 }
 0x20d   : > { %v1587_v54 = vadd.f32 %v1586_v9, %v1585_v41 }
 0x20e   : > { %v1596_v56 = vadd.f32 %v1595_v63, %v1594_v58 }
 0x20f   : > { %v1588_v20 = vrot.slane %v1587_v54, 1 }
 0x210   : > { %v1597_v7 = vrot.slane %v1596_v56, 1 }
 0x211   : > { %v1589_v30 = vadd.f32 %v1588_v20, %v1587_v54 }
 0x212   : > { %v1598_v10 = vadd.f32 %v1597_v7, %v1596_v56 }
 0x214   : > { %v1601_v51 = vrot.slane %v1598_v10, 7 }
 0x216   : > { %v1603_v24 = vsel %vm1602_vm5, %v1589_v30, %v1601_v51 }
 0x217   : > { %1609 = vst.msk [vmem:[%s348_s21] sm:$0x3] %vm1607_vm7, %v1603_v24 }
 0x218   : > { %2182 = shalt.err (!%p2179_p0)
}
 0x219   : > { %2046 = dma.vmem_to_hbm [thread:$0]  (%p2318_p10), %s1624_s23, 32, %s1626_s8, %s1611_s18  }
 0x21a PF: > { %p2060_p4 = scmp.ge.s32.totalorder %s2225_s27, 2  ;;  %s1637_s15 = sand.u32 1, %s2213_s24  }
 0x21b   : > { %s1638_s9 = scalar_lea.sflag [#allocation4], %s1637_s15 }
 0x21c   : > { %p2056_p5 = pnand %p2060_p4, %p2322_p11 }
 0x21e   : > { %p2057_p7 = pneg %p2056_p5 }
 0x220   : > { %2208 = dma.done.wait (%p2057_p7), %s1638_s9, 32  }
 0x221   : > { %2210 = vsyncadd (%p2057_p7), %s1638_s9, 4294967264  ;;  %s3475_s27 = sld [smem:[#allocation12_spill]]  ;;  %s3478_s24 = smov %s2217_s25 }
 0x222   : > { %s3476_s19 = sld [smem:[#allocation11_spill]] }
 0x223   : > { %s3477_s26 = sld [smem:[#allocation13_spill]] }
 0x227   : > { %p23_p8 = scmp.ge.s32.totalorder %s3475_s27, 6  }
 0x228   : > { %s3479_s25 = smov %s3476_s19 }
 0x229   :  { %25 = sbr.rel (!%p23_p8) target bundleno = 9 (0x9), region = 109 }
 0x22e   :  { %1644 = vsyncpa [#allocation3], 1 }
 0x22f   :  { %1646 = vsyncpa [#allocation3 + $0x1], 1 }
 0x230   :  { %1647 = vsyncpa [#allocation6], 1 }
 0x231   :  { %1649 = vsyncpa [#allocation6 + $0x1], 1 }
 0x232   :  { %1650 = vsyncpa [#allocation4], 1 }
 0x233   :  { %1652 = vsyncpa [#allocation4 + $0x1], 1 }

</bundles_post_ra>
